<compile_context>
chip_gen: v5e
topology: v5e:2x2
jax: 0.10.0
libtpu: 0.0.40
codegen_flags: <defaults>
</compile_context>

<pallas_src>
import functools

import jax
import jax.numpy as jnp
from jax.experimental import pallas as pl
from jax.experimental.pallas import tpu as pltpu


def _critic_kernel(num_layers, hidden_dim, seq_len, batch,
                   x_ref, h0_ref, c0_ref, lin_w_ref, lin_b_ref, *rest):
    """Whole forward (wavefronted stacked LSTM + fused final linear).

    Ref order (after the named ones):
      rest[0:3]                 -> layer 0: w_ih^T (Din,4H) bf16, w_hh^T (H,4H) bf16,
                                   bias (1,4H) f32  (b_ih + b_hh)
      rest[3 + 2*(l-1) : +2]    -> layer l>=1: fused [W_ih^T;W_hh^T] (2H,4H) bf16,
                                   bias (1,4H) f32
      rest[3 + 2*(L-1)]         -> out_ref, shape (B, T) f32
    """
    H, T, B, L = hidden_dim, seq_len, batch, num_layers

    w_ih0 = rest[0][...]                      # (Din, 4H) bf16
    w_hh0 = rest[1][...]                      # (H,   4H) bf16
    b0 = rest[2][...]                         # (1,   4H) f32
    fused = [(rest[3 + 2 * k][...], rest[4 + 2 * k][...]) for k in range(L - 1)]
    out_ref = rest[3 + 2 * (L - 1)]

    # Hoisted layer-0 input projection: one MXU matmul for the whole sequence,
    # bias folded in once (removes matmul+bias from the serial chain).
    gates_x0 = jnp.dot(x_ref[...], w_ih0,
                       preferred_element_type=jnp.float32) + b0      # (T*B, 4H)

    lin_w = lin_w_ref[...]                    # (1, H) f32

    h = [h0_ref[l] for l in range(L)]         # each (B, H) f32
    c = [c0_ref[l] for l in range(L)]

    def cell(gates, c_prev):
        # Two full-(B,4H) EUP pushes instead of four 32-lane ones.
        sig = jax.nn.sigmoid(gates)
        th = jnp.tanh(gates)
        i = sig[:, 0 * H:1 * H]
        f = sig[:, 1 * H:2 * H]
        g = th[:, 2 * H:3 * H]
        o = sig[:, 3 * H:4 * H]
        c_new = f * c_prev + i * g
        h_new = o * jnp.tanh(c_new)
        return h_new, c_new

    vals = []                                 # per-step (B, 1) last-layer outputs

    # Wavefront: at step s, layer l handles time t = s - l. Descending layer
    # order ensures h[l-1] still holds its time-(s-l) output when layer l
    # reads it, and all per-step matmuls are mutually independent.
    for s in range(T + L - 1):
        for l in range(L - 1, -1, -1):
            t = s - l
            if t < 0 or t >= T:
                continue
            if l == 0:
                gates = gates_x0[t * B:(t + 1) * B, :] + jnp.dot(
                    h[0].astype(jnp.bfloat16), w_hh0,
                    preferred_element_type=jnp.float32)               # (B, 4H)
            else:
                w_f, b_f = fused[l - 1]
                lhs = jnp.concatenate([h[l - 1], h[l]],
                                      axis=-1).astype(jnp.bfloat16)   # (B, 2H)
                gates = jnp.dot(lhs, w_f,
                                preferred_element_type=jnp.float32) + b_f
            h[l], c[l] = cell(gates, c[l])
            if l == L - 1:
                # Folded H->1 linear: lane reduce on the otherwise-idle XLU slot.
                vals.append(jnp.sum(h[l] * lin_w, axis=-1, keepdims=True))

    # (B, T) written directly; no wrapper transpose needed.
    out_ref[...] = jnp.concatenate(vals, axis=-1) + lin_b_ref[...]


def critic_forward(x, layers, lin_w, lin_b, h0, c0):
    """x: (B, T, in_dim) float; returns (B, T) float32."""
    x = x.astype(jnp.float32)
    B, T, D = x.shape
    H = layers[0]["w_hh"].shape[1]
    L = len(layers)

    # Time-major (T*B, Din) slab, pre-cast to bf16 for the hoisted projection.
    x_2d = jnp.transpose(x, (1, 0, 2)).reshape(T * B, D).astype(jnp.bfloat16)
    lin_w_row = lin_w.reshape(1, H).astype(jnp.float32)               # (1, H)
    lin_b_r = lin_b.reshape(1, 1).astype(jnp.float32)                 # (1, 1)

    weight_inputs = [
        layers[0]["w_ih"].T.astype(jnp.bfloat16),                     # (Din, 4H)
        layers[0]["w_hh"].T.astype(jnp.bfloat16),                     # (H,   4H)
        (layers[0]["b_ih"] + layers[0]["b_hh"]).reshape(1, -1).astype(jnp.float32),
    ]
    for p in layers[1:]:
        # Fused [W_ih^T ; W_hh^T] -> one per-step matmul on the serial path.
        weight_inputs.append(
            jnp.concatenate([p["w_ih"].T, p["w_hh"].T], axis=0)
            .astype(jnp.bfloat16))                                    # (2H, 4H)
        weight_inputs.append(
            (p["b_ih"] + p["b_hh"]).reshape(1, -1).astype(jnp.float32))

    inputs = [x_2d, h0.astype(jnp.float32), c0.astype(jnp.float32),
              lin_w_row, lin_b_r] + weight_inputs

    kernel = functools.partial(_critic_kernel, L, H, T, B)
    vmem_spec = pl.BlockSpec(memory_space=pltpu.MemorySpace.VMEM)

    out = pl.pallas_call(
        kernel,
        out_shape=jax.ShapeDtypeStruct((B, T), jnp.float32),
        in_specs=[vmem_spec] * len(inputs),
        out_specs=vmem_spec,
    )(*inputs)
    return out


def critic_reference(x, layers, lin_w, lin_b, h0, c0):
    """Pure-JAX f32 reference matching torch.nn.LSTM (batch_first) + Linear."""
    x = x.astype(jnp.float32)
    B, T, _ = x.shape
    H = layers[0]["w_hh"].shape[1]
    seq = x
    for l, p in enumerate(layers):
        h, c = h0[l], c0[l]
        outs = []
        for t in range(T):
            gates = (seq[:, t, :] @ p["w_ih"].T + p["b_ih"]
                     + h @ p["w_hh"].T + p["b_hh"])
            i, f, g, o = jnp.split(gates, 4, axis=-1)
            i, f, o = jax.nn.sigmoid(i), jax.nn.sigmoid(f), jax.nn.sigmoid(o)
            g = jnp.tanh(g)
            c = f * c + i * g
            h = o * jnp.tanh(c)
            outs.append(h)
        seq = jnp.stack(outs, axis=1)
    out = seq.reshape(-1, H) @ lin_w.T + lin_b
    return out.reshape(B, T)


if __name__ == "__main__":
    # Small shapes consistent with the module: batch=2, seq=8, in_dim=4, hidden=32.
    B, T, IN_DIM, HIDDEN, NUM_LAYERS = 2, 8, 4, 32, 2

    key = jax.random.PRNGKey(0)
    k_x, k_h, k_c, key = jax.random.split(key, 4)
    x = jax.random.normal(k_x, (B, T, IN_DIM), dtype=jnp.float32)
    # TODO(synk): PyTorch draws h0/c0 with torch.randn on every forward; here
    # they are drawn once from a fixed key (documented deterministic deviation).
    h0 = jax.random.normal(k_h, (NUM_LAYERS, B, HIDDEN), dtype=jnp.float32)
    c0 = jax.random.normal(k_c, (NUM_LAYERS, B, HIDDEN), dtype=jnp.float32)

    # Deterministic parameter init, PyTorch-style U(-1/sqrt(H), 1/sqrt(H)).
    bound = 1.0 / (HIDDEN ** 0.5)
    layers = []
    for l in range(NUM_LAYERS):
        d_in = IN_DIM if l == 0 else HIDDEN
        k1, k2, k3, k4, key = jax.random.split(key, 5)
        layers.append({
            "w_ih": jax.random.uniform(k1, (4 * HIDDEN, d_in), minval=-bound, maxval=bound),
            "w_hh": jax.random.uniform(k2, (4 * HIDDEN, HIDDEN), minval=-bound, maxval=bound),
            "b_ih": jax.random.uniform(k3, (4 * HIDDEN,), minval=-bound, maxval=bound),
            "b_hh": jax.random.uniform(k4, (4 * HIDDEN,), minval=-bound, maxval=bound),
        })
    k5, k6, key = jax.random.split(key, 3)
    lin_w = jax.random.uniform(k5, (1, HIDDEN), minval=-bound, maxval=bound)
    lin_b = jax.random.uniform(k6, (1,), minval=-bound, maxval=bound)

    out = critic_forward(x, layers, lin_w, lin_b, h0, c0)
    out = jax.block_until_ready(out)

    ref = critic_reference(x, layers, lin_w, lin_b, h0, c0)
    assert out.shape == (B, T), out.shape
    # bf16 MXU operands (f32 accumulation/state) -> relaxed tolerance vs the
    # pure-f32 reference.
    assert jnp.allclose(out, ref, atol=5e-2, rtol=5e-2), \
        f"max abs err {jnp.max(jnp.abs(out - ref))}"

    print("KERNEL_OK")
</pallas_src>

<mosaic_0001>
module attributes {stable_mosaic.version = 11 : i64} {
  func.func @_critic_kernel(%arg0: memref<16x4xbf16, #tpu.memory_space<vmem>>, %arg1: memref<2x2x32xf32, #tpu.memory_space<vmem>>, %arg2: memref<2x2x32xf32, #tpu.memory_space<vmem>>, %arg3: memref<1x32xf32, #tpu.memory_space<vmem>>, %arg4: memref<1x1xf32, #tpu.memory_space<vmem>>, %arg5: memref<4x128xbf16, #tpu.memory_space<vmem>>, %arg6: memref<32x128xbf16, #tpu.memory_space<vmem>>, %arg7: memref<1x128xf32, #tpu.memory_space<vmem>>, %arg8: memref<64x128xbf16, #tpu.memory_space<vmem>>, %arg9: memref<1x128xf32, #tpu.memory_space<vmem>>, %arg10: memref<2x8xf32, #tpu.memory_space<vmem>>) attributes {dimension_semantics = [], scalar_prefetch = 0 : i64, scratch_operands = 0 : i64, tpu.core_type = #tpu.core_type<tc>} {
    %c0 = arith.constant 0 : index
    %c0_0 = arith.constant 0 : index
    %0 = vector.load %arg5[%c0, %c0_0] : memref<4x128xbf16, #tpu.memory_space<vmem>>, vector<4x128xbf16>
    %c0_1 = arith.constant 0 : index
    %c0_2 = arith.constant 0 : index
    %1 = vector.load %arg6[%c0_1, %c0_2] : memref<32x128xbf16, #tpu.memory_space<vmem>>, vector<32x128xbf16>
    %c0_3 = arith.constant 0 : index
    %c0_4 = arith.constant 0 : index
    %2 = vector.load %arg7[%c0_3, %c0_4] : memref<1x128xf32, #tpu.memory_space<vmem>>, vector<1x128xf32>
    %c0_5 = arith.constant 0 : index
    %c0_6 = arith.constant 0 : index
    %3 = vector.load %arg8[%c0_5, %c0_6] : memref<64x128xbf16, #tpu.memory_space<vmem>>, vector<64x128xbf16>
    %c0_7 = arith.constant 0 : index
    %c0_8 = arith.constant 0 : index
    %4 = vector.load %arg9[%c0_7, %c0_8] : memref<1x128xf32, #tpu.memory_space<vmem>>, vector<1x128xf32>
    %c0_9 = arith.constant 0 : index
    %c0_10 = arith.constant 0 : index
    %5 = vector.load %arg0[%c0_9, %c0_10] : memref<16x4xbf16, #tpu.memory_space<vmem>>, vector<16x4xbf16>
    %cst = arith.constant dense<0.000000e+00> : vector<16x128xf32>
    %6 = tpu.matmul %5, %0, %cst {dimension_numbers = #tpu.dot_dimension_numbers<[1], [0], [0], [1], [0, 0, 1, 1], [], []>} : vector<16x4xbf16>, vector<4x128xbf16>, vector<16x128xf32> -> vector<16x128xf32>
    %7 = vector.broadcast %2 : vector<1x128xf32> to vector<16x128xf32>
    %8 = arith.addf %6, %7 : vector<16x128xf32>
    %c0_11 = arith.constant 0 : index
    %c0_12 = arith.constant 0 : index
    %9 = vector.load %arg3[%c0_11, %c0_12] : memref<1x32xf32, #tpu.memory_space<vmem>>, vector<1x32xf32>
    %c0_13 = arith.constant 0 : index
    %c0_14 = arith.constant 0 : index
    %c0_15 = arith.constant 0 : index
    %10 = vector.load %arg1[%c0_13, %c0_14, %c0_15] : memref<2x2x32xf32, #tpu.memory_space<vmem>>, vector<1x2x32xf32>
    %11 = vector.shape_cast %10 : vector<1x2x32xf32> to vector<2x32xf32>
    %c1 = arith.constant 1 : index
    %c0_16 = arith.constant 0 : index
    %c0_17 = arith.constant 0 : index
    %12 = vector.load %arg1[%c1, %c0_16, %c0_17] : memref<2x2x32xf32, #tpu.memory_space<vmem>>, vector<1x2x32xf32>
    %13 = vector.shape_cast %12 : vector<1x2x32xf32> to vector<2x32xf32>
    %c0_18 = arith.constant 0 : index
    %c0_19 = arith.constant 0 : index
    %c0_20 = arith.constant 0 : index
    %14 = vector.load %arg2[%c0_18, %c0_19, %c0_20] : memref<2x2x32xf32, #tpu.memory_space<vmem>>, vector<1x2x32xf32>
    %15 = vector.shape_cast %14 : vector<1x2x32xf32> to vector<2x32xf32>
    %c1_21 = arith.constant 1 : index
    %c0_22 = arith.constant 0 : index
    %c0_23 = arith.constant 0 : index
    %16 = vector.load %arg2[%c1_21, %c0_22, %c0_23] : memref<2x2x32xf32, #tpu.memory_space<vmem>>, vector<1x2x32xf32>
    %17 = vector.shape_cast %16 : vector<1x2x32xf32> to vector<2x32xf32>
    %18 = vector.extract_strided_slice %8 {offsets = [0, 0], sizes = [2, 128], strides = [1, 1]} : vector<16x128xf32> to vector<2x128xf32>
    %19 = arith.truncf %11 : vector<2x32xf32> to vector<2x32xbf16>
    %cst_24 = arith.constant dense<0.000000e+00> : vector<2x128xf32>
    %20 = tpu.matmul %19, %1, %cst_24 {dimension_numbers = #tpu.dot_dimension_numbers<[1], [0], [0], [1], [0, 0, 1, 1], [], []>} : vector<2x32xbf16>, vector<32x128xbf16>, vector<2x128xf32> -> vector<2x128xf32>
    %21 = arith.addf %18, %20 : vector<2x128xf32>
    %22 = arith.negf %21 : vector<2x128xf32>
    %23 = math.exp %22 : vector<2x128xf32>
    %cst_25 = arith.constant 1.000000e+00 : f32
    %24 = vector.broadcast %cst_25 : f32 to vector<2x128xf32>
    %25 = arith.addf %24, %23 : vector<2x128xf32>
    %26 = arith.divf %24, %25 : vector<2x128xf32>
    %27 = math.tanh %21 : vector<2x128xf32>
    %28 = vector.extract_strided_slice %26 {offsets = [0, 0], sizes = [2, 32], strides = [1, 1]} : vector<2x128xf32> to vector<2x32xf32>
    %29 = vector.extract_strided_slice %26 {offsets = [0, 32], sizes = [2, 32], strides = [1, 1]} : vector<2x128xf32> to vector<2x32xf32>
    %30 = vector.extract_strided_slice %27 {offsets = [0, 64], sizes = [2, 32], strides = [1, 1]} : vector<2x128xf32> to vector<2x32xf32>
    %31 = vector.extract_strided_slice %26 {offsets = [0, 96], sizes = [2, 32], strides = [1, 1]} : vector<2x128xf32> to vector<2x32xf32>
    %32 = arith.mulf %29, %15 : vector<2x32xf32>
    %33 = arith.mulf %28, %30 : vector<2x32xf32>
    %34 = arith.addf %32, %33 : vector<2x32xf32>
    %35 = math.tanh %34 : vector<2x32xf32>
    %36 = arith.mulf %31, %35 : vector<2x32xf32>
    %37 = tpu.concatenate %36, %13 in 1 : vector<2x32xf32>, vector<2x32xf32> -> vector<2x64xf32>
    %38 = arith.truncf %37 : vector<2x64xf32> to vector<2x64xbf16>
    %cst_26 = arith.constant dense<0.000000e+00> : vector<2x128xf32>
    %39 = tpu.matmul %38, %3, %cst_26 {dimension_numbers = #tpu.dot_dimension_numbers<[1], [0], [0], [1], [0, 0, 1, 1], [], []>} : vector<2x64xbf16>, vector<64x128xbf16>, vector<2x128xf32> -> vector<2x128xf32>
    %40 = vector.broadcast %4 : vector<1x128xf32> to vector<2x128xf32>
    %41 = arith.addf %39, %40 : vector<2x128xf32>
    %42 = arith.negf %41 : vector<2x128xf32>
    %43 = math.exp %42 : vector<2x128xf32>
    %cst_27 = arith.constant 1.000000e+00 : f32
    %44 = vector.broadcast %cst_27 : f32 to vector<2x128xf32>
    %45 = arith.addf %44, %43 : vector<2x128xf32>
    %46 = arith.divf %44, %45 : vector<2x128xf32>
    %47 = math.tanh %41 : vector<2x128xf32>
    %48 = vector.extract_strided_slice %46 {offsets = [0, 0], sizes = [2, 32], strides = [1, 1]} : vector<2x128xf32> to vector<2x32xf32>
    %49 = vector.extract_strided_slice %46 {offsets = [0, 32], sizes = [2, 32], strides = [1, 1]} : vector<2x128xf32> to vector<2x32xf32>
    %50 = vector.extract_strided_slice %47 {offsets = [0, 64], sizes = [2, 32], strides = [1, 1]} : vector<2x128xf32> to vector<2x32xf32>
    %51 = vector.extract_strided_slice %46 {offsets = [0, 96], sizes = [2, 32], strides = [1, 1]} : vector<2x128xf32> to vector<2x32xf32>
    %52 = arith.mulf %49, %17 : vector<2x32xf32>
    %53 = arith.mulf %48, %50 : vector<2x32xf32>
    %54 = arith.addf %52, %53 : vector<2x32xf32>
    %55 = math.tanh %54 : vector<2x32xf32>
    %56 = arith.mulf %51, %55 : vector<2x32xf32>
    %57 = vector.broadcast %9 : vector<1x32xf32> to vector<2x32xf32>
    %58 = arith.mulf %56, %57 : vector<2x32xf32>
    %cst_28 = arith.constant dense<0.000000e+00> : vector<2xf32>
    %59 = vector.multi_reduction <add>, %58, %cst_28 [1] : vector<2x32xf32> to vector<2xf32>
    %60 = vector.shape_cast %59 : vector<2xf32> to vector<2x1xf32>
    %61 = vector.extract_strided_slice %8 {offsets = [2, 0], sizes = [2, 128], strides = [1, 1]} : vector<16x128xf32> to vector<2x128xf32>
    %62 = arith.truncf %36 : vector<2x32xf32> to vector<2x32xbf16>
    %cst_29 = arith.constant dense<0.000000e+00> : vector<2x128xf32>
    %63 = tpu.matmul %62, %1, %cst_29 {dimension_numbers = #tpu.dot_dimension_numbers<[1], [0], [0], [1], [0, 0, 1, 1], [], []>} : vector<2x32xbf16>, vector<32x128xbf16>, vector<2x128xf32> -> vector<2x128xf32>
    %64 = arith.addf %61, %63 : vector<2x128xf32>
    %65 = arith.negf %64 : vector<2x128xf32>
    %66 = math.exp %65 : vector<2x128xf32>
    %cst_30 = arith.constant 1.000000e+00 : f32
    %67 = vector.broadcast %cst_30 : f32 to vector<2x128xf32>
    %68 = arith.addf %67, %66 : vector<2x128xf32>
    %69 = arith.divf %67, %68 : vector<2x128xf32>
    %70 = math.tanh %64 : vector<2x128xf32>
    %71 = vector.extract_strided_slice %69 {offsets = [0, 0], sizes = [2, 32], strides = [1, 1]} : vector<2x128xf32> to vector<2x32xf32>
    %72 = vector.extract_strided_slice %69 {offsets = [0, 32], sizes = [2, 32], strides = [1, 1]} : vector<2x128xf32> to vector<2x32xf32>
    %73 = vector.extract_strided_slice %70 {offsets = [0, 64], sizes = [2, 32], strides = [1, 1]} : vector<2x128xf32> to vector<2x32xf32>
    %74 = vector.extract_strided_slice %69 {offsets = [0, 96], sizes = [2, 32], strides = [1, 1]} : vector<2x128xf32> to vector<2x32xf32>
    %75 = arith.mulf %72, %34 : vector<2x32xf32>
    %76 = arith.mulf %71, %73 : vector<2x32xf32>
    %77 = arith.addf %75, %76 : vector<2x32xf32>
    %78 = math.tanh %77 : vector<2x32xf32>
    %79 = arith.mulf %74, %78 : vector<2x32xf32>
    %80 = tpu.concatenate %79, %56 in 1 : vector<2x32xf32>, vector<2x32xf32> -> vector<2x64xf32>
    %81 = arith.truncf %80 : vector<2x64xf32> to vector<2x64xbf16>
    %cst_31 = arith.constant dense<0.000000e+00> : vector<2x128xf32>
    %82 = tpu.matmul %81, %3, %cst_31 {dimension_numbers = #tpu.dot_dimension_numbers<[1], [0], [0], [1], [0, 0, 1, 1], [], []>} : vector<2x64xbf16>, vector<64x128xbf16>, vector<2x128xf32> -> vector<2x128xf32>
    %83 = vector.broadcast %4 : vector<1x128xf32> to vector<2x128xf32>
    %84 = arith.addf %82, %83 : vector<2x128xf32>
    %85 = arith.negf %84 : vector<2x128xf32>
    %86 = math.exp %85 : vector<2x128xf32>
    %cst_32 = arith.constant 1.000000e+00 : f32
    %87 = vector.broadcast %cst_32 : f32 to vector<2x128xf32>
    %88 = arith.addf %87, %86 : vector<2x128xf32>
    %89 = arith.divf %87, %88 : vector<2x128xf32>
    %90 = math.tanh %84 : vector<2x128xf32>
    %91 = vector.extract_strided_slice %89 {offsets = [0, 0], sizes = [2, 32], strides = [1, 1]} : vector<2x128xf32> to vector<2x32xf32>
    %92 = vector.extract_strided_slice %89 {offsets = [0, 32], sizes = [2, 32], strides = [1, 1]} : vector<2x128xf32> to vector<2x32xf32>
    %93 = vector.extract_strided_slice %90 {offsets = [0, 64], sizes = [2, 32], strides = [1, 1]} : vector<2x128xf32> to vector<2x32xf32>
    %94 = vector.extract_strided_slice %89 {offsets = [0, 96], sizes = [2, 32], strides = [1, 1]} : vector<2x128xf32> to vector<2x32xf32>
    %95 = arith.mulf %92, %54 : vector<2x32xf32>
    %96 = arith.mulf %91, %93 : vector<2x32xf32>
    %97 = arith.addf %95, %96 : vector<2x32xf32>
    %98 = math.tanh %97 : vector<2x32xf32>
    %99 = arith.mulf %94, %98 : vector<2x32xf32>
    %100 = vector.broadcast %9 : vector<1x32xf32> to vector<2x32xf32>
    %101 = arith.mulf %99, %100 : vector<2x32xf32>
    %cst_33 = arith.constant dense<0.000000e+00> : vector<2xf32>
    %102 = vector.multi_reduction <add>, %101, %cst_33 [1] : vector<2x32xf32> to vector<2xf32>
    %103 = vector.shape_cast %102 : vector<2xf32> to vector<2x1xf32>
    %104 = vector.extract_strided_slice %8 {offsets = [4, 0], sizes = [2, 128], strides = [1, 1]} : vector<16x128xf32> to vector<2x128xf32>
    %105 = arith.truncf %79 : vector<2x32xf32> to vector<2x32xbf16>
    %cst_34 = arith.constant dense<0.000000e+00> : vector<2x128xf32>
    %106 = tpu.matmul %105, %1, %cst_34 {dimension_numbers = #tpu.dot_dimension_numbers<[1], [0], [0], [1], [0, 0, 1, 1], [], []>} : vector<2x32xbf16>, vector<32x128xbf16>, vector<2x128xf32> -> vector<2x128xf32>
    %107 = arith.addf %104, %106 : vector<2x128xf32>
    %108 = arith.negf %107 : vector<2x128xf32>
    %109 = math.exp %108 : vector<2x128xf32>
    %cst_35 = arith.constant 1.000000e+00 : f32
    %110 = vector.broadcast %cst_35 : f32 to vector<2x128xf32>
    %111 = arith.addf %110, %109 : vector<2x128xf32>
    %112 = arith.divf %110, %111 : vector<2x128xf32>
    %113 = math.tanh %107 : vector<2x128xf32>
    %114 = vector.extract_strided_slice %112 {offsets = [0, 0], sizes = [2, 32], strides = [1, 1]} : vector<2x128xf32> to vector<2x32xf32>
    %115 = vector.extract_strided_slice %112 {offsets = [0, 32], sizes = [2, 32], strides = [1, 1]} : vector<2x128xf32> to vector<2x32xf32>
    %116 = vector.extract_strided_slice %113 {offsets = [0, 64], sizes = [2, 32], strides = [1, 1]} : vector<2x128xf32> to vector<2x32xf32>
    %117 = vector.extract_strided_slice %112 {offsets = [0, 96], sizes = [2, 32], strides = [1, 1]} : vector<2x128xf32> to vector<2x32xf32>
    %118 = arith.mulf %115, %77 : vector<2x32xf32>
    %119 = arith.mulf %114, %116 : vector<2x32xf32>
    %120 = arith.addf %118, %119 : vector<2x32xf32>
    %121 = math.tanh %120 : vector<2x32xf32>
    %122 = arith.mulf %117, %121 : vector<2x32xf32>
    %123 = tpu.concatenate %122, %99 in 1 : vector<2x32xf32>, vector<2x32xf32> -> vector<2x64xf32>
    %124 = arith.truncf %123 : vector<2x64xf32> to vector<2x64xbf16>
    %cst_36 = arith.constant dense<0.000000e+00> : vector<2x128xf32>
    %125 = tpu.matmul %124, %3, %cst_36 {dimension_numbers = #tpu.dot_dimension_numbers<[1], [0], [0], [1], [0, 0, 1, 1], [], []>} : vector<2x64xbf16>, vector<64x128xbf16>, vector<2x128xf32> -> vector<2x128xf32>
    %126 = vector.broadcast %4 : vector<1x128xf32> to vector<2x128xf32>
    %127 = arith.addf %125, %126 : vector<2x128xf32>
    %128 = arith.negf %127 : vector<2x128xf32>
    %129 = math.exp %128 : vector<2x128xf32>
    %cst_37 = arith.constant 1.000000e+00 : f32
    %130 = vector.broadcast %cst_37 : f32 to vector<2x128xf32>
    %131 = arith.addf %130, %129 : vector<2x128xf32>
    %132 = arith.divf %130, %131 : vector<2x128xf32>
    %133 = math.tanh %127 : vector<2x128xf32>
    %134 = vector.extract_strided_slice %132 {offsets = [0, 0], sizes = [2, 32], strides = [1, 1]} : vector<2x128xf32> to vector<2x32xf32>
    %135 = vector.extract_strided_slice %132 {offsets = [0, 32], sizes = [2, 32], strides = [1, 1]} : vector<2x128xf32> to vector<2x32xf32>
    %136 = vector.extract_strided_slice %133 {offsets = [0, 64], sizes = [2, 32], strides = [1, 1]} : vector<2x128xf32> to vector<2x32xf32>
    %137 = vector.extract_strided_slice %132 {offsets = [0, 96], sizes = [2, 32], strides = [1, 1]} : vector<2x128xf32> to vector<2x32xf32>
    %138 = arith.mulf %135, %97 : vector<2x32xf32>
    %139 = arith.mulf %134, %136 : vector<2x32xf32>
    %140 = arith.addf %138, %139 : vector<2x32xf32>
    %141 = math.tanh %140 : vector<2x32xf32>
    %142 = arith.mulf %137, %141 : vector<2x32xf32>
    %143 = vector.broadcast %9 : vector<1x32xf32> to vector<2x32xf32>
    %144 = arith.mulf %142, %143 : vector<2x32xf32>
    %cst_38 = arith.constant dense<0.000000e+00> : vector<2xf32>
    %145 = vector.multi_reduction <add>, %144, %cst_38 [1] : vector<2x32xf32> to vector<2xf32>
    %146 = vector.shape_cast %145 : vector<2xf32> to vector<2x1xf32>
    %147 = vector.extract_strided_slice %8 {offsets = [6, 0], sizes = [2, 128], strides = [1, 1]} : vector<16x128xf32> to vector<2x128xf32>
    %148 = arith.truncf %122 : vector<2x32xf32> to vector<2x32xbf16>
    %cst_39 = arith.constant dense<0.000000e+00> : vector<2x128xf32>
    %149 = tpu.matmul %148, %1, %cst_39 {dimension_numbers = #tpu.dot_dimension_numbers<[1], [0], [0], [1], [0, 0, 1, 1], [], []>} : vector<2x32xbf16>, vector<32x128xbf16>, vector<2x128xf32> -> vector<2x128xf32>
    %150 = arith.addf %147, %149 : vector<2x128xf32>
    %151 = arith.negf %150 : vector<2x128xf32>
    %152 = math.exp %151 : vector<2x128xf32>
    %cst_40 = arith.constant 1.000000e+00 : f32
    %153 = vector.broadcast %cst_40 : f32 to vector<2x128xf32>
    %154 = arith.addf %153, %152 : vector<2x128xf32>
    %155 = arith.divf %153, %154 : vector<2x128xf32>
    %156 = math.tanh %150 : vector<2x128xf32>
    %157 = vector.extract_strided_slice %155 {offsets = [0, 0], sizes = [2, 32], strides = [1, 1]} : vector<2x128xf32> to vector<2x32xf32>
    %158 = vector.extract_strided_slice %155 {offsets = [0, 32], sizes = [2, 32], strides = [1, 1]} : vector<2x128xf32> to vector<2x32xf32>
    %159 = vector.extract_strided_slice %156 {offsets = [0, 64], sizes = [2, 32], strides = [1, 1]} : vector<2x128xf32> to vector<2x32xf32>
    %160 = vector.extract_strided_slice %155 {offsets = [0, 96], sizes = [2, 32], strides = [1, 1]} : vector<2x128xf32> to vector<2x32xf32>
    %161 = arith.mulf %158, %120 : vector<2x32xf32>
    %162 = arith.mulf %157, %159 : vector<2x32xf32>
    %163 = arith.addf %161, %162 : vector<2x32xf32>
    %164 = math.tanh %163 : vector<2x32xf32>
    %165 = arith.mulf %160, %164 : vector<2x32xf32>
    %166 = tpu.concatenate %165, %142 in 1 : vector<2x32xf32>, vector<2x32xf32> -> vector<2x64xf32>
    %167 = arith.truncf %166 : vector<2x64xf32> to vector<2x64xbf16>
    %cst_41 = arith.constant dense<0.000000e+00> : vector<2x128xf32>
    %168 = tpu.matmul %167, %3, %cst_41 {dimension_numbers = #tpu.dot_dimension_numbers<[1], [0], [0], [1], [0, 0, 1, 1], [], []>} : vector<2x64xbf16>, vector<64x128xbf16>, vector<2x128xf32> -> vector<2x128xf32>
    %169 = vector.broadcast %4 : vector<1x128xf32> to vector<2x128xf32>
    %170 = arith.addf %168, %169 : vector<2x128xf32>
    %171 = arith.negf %170 : vector<2x128xf32>
    %172 = math.exp %171 : vector<2x128xf32>
    %cst_42 = arith.constant 1.000000e+00 : f32
    %173 = vector.broadcast %cst_42 : f32 to vector<2x128xf32>
    %174 = arith.addf %173, %172 : vector<2x128xf32>
    %175 = arith.divf %173, %174 : vector<2x128xf32>
    %176 = math.tanh %170 : vector<2x128xf32>
    %177 = vector.extract_strided_slice %175 {offsets = [0, 0], sizes = [2, 32], strides = [1, 1]} : vector<2x128xf32> to vector<2x32xf32>
    %178 = vector.extract_strided_slice %175 {offsets = [0, 32], sizes = [2, 32], strides = [1, 1]} : vector<2x128xf32> to vector<2x32xf32>
    %179 = vector.extract_strided_slice %176 {offsets = [0, 64], sizes = [2, 32], strides = [1, 1]} : vector<2x128xf32> to vector<2x32xf32>
    %180 = vector.extract_strided_slice %175 {offsets = [0, 96], sizes = [2, 32], strides = [1, 1]} : vector<2x128xf32> to vector<2x32xf32>
    %181 = arith.mulf %178, %140 : vector<2x32xf32>
    %182 = arith.mulf %177, %179 : vector<2x32xf32>
    %183 = arith.addf %181, %182 : vector<2x32xf32>
    %184 = math.tanh %183 : vector<2x32xf32>
    %185 = arith.mulf %180, %184 : vector<2x32xf32>
    %186 = vector.broadcast %9 : vector<1x32xf32> to vector<2x32xf32>
    %187 = arith.mulf %185, %186 : vector<2x32xf32>
    %cst_43 = arith.constant dense<0.000000e+00> : vector<2xf32>
    %188 = vector.multi_reduction <add>, %187, %cst_43 [1] : vector<2x32xf32> to vector<2xf32>
    %189 = vector.shape_cast %188 : vector<2xf32> to vector<2x1xf32>
    %190 = vector.extract_strided_slice %8 {offsets = [8, 0], sizes = [2, 128], strides = [1, 1]} : vector<16x128xf32> to vector<2x128xf32>
    %191 = arith.truncf %165 : vector<2x32xf32> to vector<2x32xbf16>
    %cst_44 = arith.constant dense<0.000000e+00> : vector<2x128xf32>
    %192 = tpu.matmul %191, %1, %cst_44 {dimension_numbers = #tpu.dot_dimension_numbers<[1], [0], [0], [1], [0, 0, 1, 1], [], []>} : vector<2x32xbf16>, vector<32x128xbf16>, vector<2x128xf32> -> vector<2x128xf32>
    %193 = arith.addf %190, %192 : vector<2x128xf32>
    %194 = arith.negf %193 : vector<2x128xf32>
    %195 = math.exp %194 : vector<2x128xf32>
    %cst_45 = arith.constant 1.000000e+00 : f32
    %196 = vector.broadcast %cst_45 : f32 to vector<2x128xf32>
    %197 = arith.addf %196, %195 : vector<2x128xf32>
    %198 = arith.divf %196, %197 : vector<2x128xf32>
    %199 = math.tanh %193 : vector<2x128xf32>
    %200 = vector.extract_strided_slice %198 {offsets = [0, 0], sizes = [2, 32], strides = [1, 1]} : vector<2x128xf32> to vector<2x32xf32>
    %201 = vector.extract_strided_slice %198 {offsets = [0, 32], sizes = [2, 32], strides = [1, 1]} : vector<2x128xf32> to vector<2x32xf32>
    %202 = vector.extract_strided_slice %199 {offsets = [0, 64], sizes = [2, 32], strides = [1, 1]} : vector<2x128xf32> to vector<2x32xf32>
    %203 = vector.extract_strided_slice %198 {offsets = [0, 96], sizes = [2, 32], strides = [1, 1]} : vector<2x128xf32> to vector<2x32xf32>
    %204 = arith.mulf %201, %163 : vector<2x32xf32>
    %205 = arith.mulf %200, %202 : vector<2x32xf32>
    %206 = arith.addf %204, %205 : vector<2x32xf32>
    %207 = math.tanh %206 : vector<2x32xf32>
    %208 = arith.mulf %203, %207 : vector<2x32xf32>
    %209 = tpu.concatenate %208, %185 in 1 : vector<2x32xf32>, vector<2x32xf32> -> vector<2x64xf32>
    %210 = arith.truncf %209 : vector<2x64xf32> to vector<2x64xbf16>
    %cst_46 = arith.constant dense<0.000000e+00> : vector<2x128xf32>
    %211 = tpu.matmul %210, %3, %cst_46 {dimension_numbers = #tpu.dot_dimension_numbers<[1], [0], [0], [1], [0, 0, 1, 1], [], []>} : vector<2x64xbf16>, vector<64x128xbf16>, vector<2x128xf32> -> vector<2x128xf32>
    %212 = vector.broadcast %4 : vector<1x128xf32> to vector<2x128xf32>
    %213 = arith.addf %211, %212 : vector<2x128xf32>
    %214 = arith.negf %213 : vector<2x128xf32>
    %215 = math.exp %214 : vector<2x128xf32>
    %cst_47 = arith.constant 1.000000e+00 : f32
    %216 = vector.broadcast %cst_47 : f32 to vector<2x128xf32>
    %217 = arith.addf %216, %215 : vector<2x128xf32>
    %218 = arith.divf %216, %217 : vector<2x128xf32>
    %219 = math.tanh %213 : vector<2x128xf32>
    %220 = vector.extract_strided_slice %218 {offsets = [0, 0], sizes = [2, 32], strides = [1, 1]} : vector<2x128xf32> to vector<2x32xf32>
    %221 = vector.extract_strided_slice %218 {offsets = [0, 32], sizes = [2, 32], strides = [1, 1]} : vector<2x128xf32> to vector<2x32xf32>
    %222 = vector.extract_strided_slice %219 {offsets = [0, 64], sizes = [2, 32], strides = [1, 1]} : vector<2x128xf32> to vector<2x32xf32>
    %223 = vector.extract_strided_slice %218 {offsets = [0, 96], sizes = [2, 32], strides = [1, 1]} : vector<2x128xf32> to vector<2x32xf32>
    %224 = arith.mulf %221, %183 : vector<2x32xf32>
    %225 = arith.mulf %220, %222 : vector<2x32xf32>
    %226 = arith.addf %224, %225 : vector<2x32xf32>
    %227 = math.tanh %226 : vector<2x32xf32>
    %228 = arith.mulf %223, %227 : vector<2x32xf32>
    %229 = vector.broadcast %9 : vector<1x32xf32> to vector<2x32xf32>
    %230 = arith.mulf %228, %229 : vector<2x32xf32>
    %cst_48 = arith.constant dense<0.000000e+00> : vector<2xf32>
    %231 = vector.multi_reduction <add>, %230, %cst_48 [1] : vector<2x32xf32> to vector<2xf32>
    %232 = vector.shape_cast %231 : vector<2xf32> to vector<2x1xf32>
    %233 = vector.extract_strided_slice %8 {offsets = [10, 0], sizes = [2, 128], strides = [1, 1]} : vector<16x128xf32> to vector<2x128xf32>
    %234 = arith.truncf %208 : vector<2x32xf32> to vector<2x32xbf16>
    %cst_49 = arith.constant dense<0.000000e+00> : vector<2x128xf32>
    %235 = tpu.matmul %234, %1, %cst_49 {dimension_numbers = #tpu.dot_dimension_numbers<[1], [0], [0], [1], [0, 0, 1, 1], [], []>} : vector<2x32xbf16>, vector<32x128xbf16>, vector<2x128xf32> -> vector<2x128xf32>
    %236 = arith.addf %233, %235 : vector<2x128xf32>
    %237 = arith.negf %236 : vector<2x128xf32>
    %238 = math.exp %237 : vector<2x128xf32>
    %cst_50 = arith.constant 1.000000e+00 : f32
    %239 = vector.broadcast %cst_50 : f32 to vector<2x128xf32>
    %240 = arith.addf %239, %238 : vector<2x128xf32>
    %241 = arith.divf %239, %240 : vector<2x128xf32>
    %242 = math.tanh %236 : vector<2x128xf32>
    %243 = vector.extract_strided_slice %241 {offsets = [0, 0], sizes = [2, 32], strides = [1, 1]} : vector<2x128xf32> to vector<2x32xf32>
    %244 = vector.extract_strided_slice %241 {offsets = [0, 32], sizes = [2, 32], strides = [1, 1]} : vector<2x128xf32> to vector<2x32xf32>
    %245 = vector.extract_strided_slice %242 {offsets = [0, 64], sizes = [2, 32], strides = [1, 1]} : vector<2x128xf32> to vector<2x32xf32>
    %246 = vector.extract_strided_slice %241 {offsets = [0, 96], sizes = [2, 32], strides = [1, 1]} : vector<2x128xf32> to vector<2x32xf32>
    %247 = arith.mulf %244, %206 : vector<2x32xf32>
    %248 = arith.mulf %243, %245 : vector<2x32xf32>
    %249 = arith.addf %247, %248 : vector<2x32xf32>
    %250 = math.tanh %249 : vector<2x32xf32>
    %251 = arith.mulf %246, %250 : vector<2x32xf32>
    %252 = tpu.concatenate %251, %228 in 1 : vector<2x32xf32>, vector<2x32xf32> -> vector<2x64xf32>
    %253 = arith.truncf %252 : vector<2x64xf32> to vector<2x64xbf16>
    %cst_51 = arith.constant dense<0.000000e+00> : vector<2x128xf32>
    %254 = tpu.matmul %253, %3, %cst_51 {dimension_numbers = #tpu.dot_dimension_numbers<[1], [0], [0], [1], [0, 0, 1, 1], [], []>} : vector<2x64xbf16>, vector<64x128xbf16>, vector<2x128xf32> -> vector<2x128xf32>
    %255 = vector.broadcast %4 : vector<1x128xf32> to vector<2x128xf32>
    %256 = arith.addf %254, %255 : vector<2x128xf32>
    %257 = arith.negf %256 : vector<2x128xf32>
    %258 = math.exp %257 : vector<2x128xf32>
    %cst_52 = arith.constant 1.000000e+00 : f32
    %259 = vector.broadcast %cst_52 : f32 to vector<2x128xf32>
    %260 = arith.addf %259, %258 : vector<2x128xf32>
    %261 = arith.divf %259, %260 : vector<2x128xf32>
    %262 = math.tanh %256 : vector<2x128xf32>
    %263 = vector.extract_strided_slice %261 {offsets = [0, 0], sizes = [2, 32], strides = [1, 1]} : vector<2x128xf32> to vector<2x32xf32>
    %264 = vector.extract_strided_slice %261 {offsets = [0, 32], sizes = [2, 32], strides = [1, 1]} : vector<2x128xf32> to vector<2x32xf32>
    %265 = vector.extract_strided_slice %262 {offsets = [0, 64], sizes = [2, 32], strides = [1, 1]} : vector<2x128xf32> to vector<2x32xf32>
    %266 = vector.extract_strided_slice %261 {offsets = [0, 96], sizes = [2, 32], strides = [1, 1]} : vector<2x128xf32> to vector<2x32xf32>
    %267 = arith.mulf %264, %226 : vector<2x32xf32>
    %268 = arith.mulf %263, %265 : vector<2x32xf32>
    %269 = arith.addf %267, %268 : vector<2x32xf32>
    %270 = math.tanh %269 : vector<2x32xf32>
    %271 = arith.mulf %266, %270 : vector<2x32xf32>
    %272 = vector.broadcast %9 : vector<1x32xf32> to vector<2x32xf32>
    %273 = arith.mulf %271, %272 : vector<2x32xf32>
    %cst_53 = arith.constant dense<0.000000e+00> : vector<2xf32>
    %274 = vector.multi_reduction <add>, %273, %cst_53 [1] : vector<2x32xf32> to vector<2xf32>
    %275 = vector.shape_cast %274 : vector<2xf32> to vector<2x1xf32>
    %276 = vector.extract_strided_slice %8 {offsets = [12, 0], sizes = [2, 128], strides = [1, 1]} : vector<16x128xf32> to vector<2x128xf32>
    %277 = arith.truncf %251 : vector<2x32xf32> to vector<2x32xbf16>
    %cst_54 = arith.constant dense<0.000000e+00> : vector<2x128xf32>
    %278 = tpu.matmul %277, %1, %cst_54 {dimension_numbers = #tpu.dot_dimension_numbers<[1], [0], [0], [1], [0, 0, 1, 1], [], []>} : vector<2x32xbf16>, vector<32x128xbf16>, vector<2x128xf32> -> vector<2x128xf32>
    %279 = arith.addf %276, %278 : vector<2x128xf32>
    %280 = arith.negf %279 : vector<2x128xf32>
    %281 = math.exp %280 : vector<2x128xf32>
    %cst_55 = arith.constant 1.000000e+00 : f32
    %282 = vector.broadcast %cst_55 : f32 to vector<2x128xf32>
    %283 = arith.addf %282, %281 : vector<2x128xf32>
    %284 = arith.divf %282, %283 : vector<2x128xf32>
    %285 = math.tanh %279 : vector<2x128xf32>
    %286 = vector.extract_strided_slice %284 {offsets = [0, 0], sizes = [2, 32], strides = [1, 1]} : vector<2x128xf32> to vector<2x32xf32>
    %287 = vector.extract_strided_slice %284 {offsets = [0, 32], sizes = [2, 32], strides = [1, 1]} : vector<2x128xf32> to vector<2x32xf32>
    %288 = vector.extract_strided_slice %285 {offsets = [0, 64], sizes = [2, 32], strides = [1, 1]} : vector<2x128xf32> to vector<2x32xf32>
    %289 = vector.extract_strided_slice %284 {offsets = [0, 96], sizes = [2, 32], strides = [1, 1]} : vector<2x128xf32> to vector<2x32xf32>
    %290 = arith.mulf %287, %249 : vector<2x32xf32>
    %291 = arith.mulf %286, %288 : vector<2x32xf32>
    %292 = arith.addf %290, %291 : vector<2x32xf32>
    %293 = math.tanh %292 : vector<2x32xf32>
    %294 = arith.mulf %289, %293 : vector<2x32xf32>
    %295 = tpu.concatenate %294, %271 in 1 : vector<2x32xf32>, vector<2x32xf32> -> vector<2x64xf32>
    %296 = arith.truncf %295 : vector<2x64xf32> to vector<2x64xbf16>
    %cst_56 = arith.constant dense<0.000000e+00> : vector<2x128xf32>
    %297 = tpu.matmul %296, %3, %cst_56 {dimension_numbers = #tpu.dot_dimension_numbers<[1], [0], [0], [1], [0, 0, 1, 1], [], []>} : vector<2x64xbf16>, vector<64x128xbf16>, vector<2x128xf32> -> vector<2x128xf32>
    %298 = vector.broadcast %4 : vector<1x128xf32> to vector<2x128xf32>
    %299 = arith.addf %297, %298 : vector<2x128xf32>
    %300 = arith.negf %299 : vector<2x128xf32>
    %301 = math.exp %300 : vector<2x128xf32>
    %cst_57 = arith.constant 1.000000e+00 : f32
    %302 = vector.broadcast %cst_57 : f32 to vector<2x128xf32>
    %303 = arith.addf %302, %301 : vector<2x128xf32>
    %304 = arith.divf %302, %303 : vector<2x128xf32>
    %305 = math.tanh %299 : vector<2x128xf32>
    %306 = vector.extract_strided_slice %304 {offsets = [0, 0], sizes = [2, 32], strides = [1, 1]} : vector<2x128xf32> to vector<2x32xf32>
    %307 = vector.extract_strided_slice %304 {offsets = [0, 32], sizes = [2, 32], strides = [1, 1]} : vector<2x128xf32> to vector<2x32xf32>
    %308 = vector.extract_strided_slice %305 {offsets = [0, 64], sizes = [2, 32], strides = [1, 1]} : vector<2x128xf32> to vector<2x32xf32>
    %309 = vector.extract_strided_slice %304 {offsets = [0, 96], sizes = [2, 32], strides = [1, 1]} : vector<2x128xf32> to vector<2x32xf32>
    %310 = arith.mulf %307, %269 : vector<2x32xf32>
    %311 = arith.mulf %306, %308 : vector<2x32xf32>
    %312 = arith.addf %310, %311 : vector<2x32xf32>
    %313 = math.tanh %312 : vector<2x32xf32>
    %314 = arith.mulf %309, %313 : vector<2x32xf32>
    %315 = vector.broadcast %9 : vector<1x32xf32> to vector<2x32xf32>
    %316 = arith.mulf %314, %315 : vector<2x32xf32>
    %cst_58 = arith.constant dense<0.000000e+00> : vector<2xf32>
    %317 = vector.multi_reduction <add>, %316, %cst_58 [1] : vector<2x32xf32> to vector<2xf32>
    %318 = vector.shape_cast %317 : vector<2xf32> to vector<2x1xf32>
    %319 = vector.extract_strided_slice %8 {offsets = [14, 0], sizes = [2, 128], strides = [1, 1]} : vector<16x128xf32> to vector<2x128xf32>
    %320 = arith.truncf %294 : vector<2x32xf32> to vector<2x32xbf16>
    %cst_59 = arith.constant dense<0.000000e+00> : vector<2x128xf32>
    %321 = tpu.matmul %320, %1, %cst_59 {dimension_numbers = #tpu.dot_dimension_numbers<[1], [0], [0], [1], [0, 0, 1, 1], [], []>} : vector<2x32xbf16>, vector<32x128xbf16>, vector<2x128xf32> -> vector<2x128xf32>
    %322 = arith.addf %319, %321 : vector<2x128xf32>
    %323 = arith.negf %322 : vector<2x128xf32>
    %324 = math.exp %323 : vector<2x128xf32>
    %cst_60 = arith.constant 1.000000e+00 : f32
    %325 = vector.broadcast %cst_60 : f32 to vector<2x128xf32>
    %326 = arith.addf %325, %324 : vector<2x128xf32>
    %327 = arith.divf %325, %326 : vector<2x128xf32>
    %328 = math.tanh %322 : vector<2x128xf32>
    %329 = vector.extract_strided_slice %327 {offsets = [0, 0], sizes = [2, 32], strides = [1, 1]} : vector<2x128xf32> to vector<2x32xf32>
    %330 = vector.extract_strided_slice %327 {offsets = [0, 32], sizes = [2, 32], strides = [1, 1]} : vector<2x128xf32> to vector<2x32xf32>
    %331 = vector.extract_strided_slice %328 {offsets = [0, 64], sizes = [2, 32], strides = [1, 1]} : vector<2x128xf32> to vector<2x32xf32>
    %332 = vector.extract_strided_slice %327 {offsets = [0, 96], sizes = [2, 32], strides = [1, 1]} : vector<2x128xf32> to vector<2x32xf32>
    %333 = arith.mulf %330, %292 : vector<2x32xf32>
    %334 = arith.mulf %329, %331 : vector<2x32xf32>
    %335 = arith.addf %333, %334 : vector<2x32xf32>
    %336 = math.tanh %335 : vector<2x32xf32>
    %337 = arith.mulf %332, %336 : vector<2x32xf32>
    %338 = tpu.concatenate %337, %314 in 1 : vector<2x32xf32>, vector<2x32xf32> -> vector<2x64xf32>
    %339 = arith.truncf %338 : vector<2x64xf32> to vector<2x64xbf16>
    %cst_61 = arith.constant dense<0.000000e+00> : vector<2x128xf32>
    %340 = tpu.matmul %339, %3, %cst_61 {dimension_numbers = #tpu.dot_dimension_numbers<[1], [0], [0], [1], [0, 0, 1, 1], [], []>} : vector<2x64xbf16>, vector<64x128xbf16>, vector<2x128xf32> -> vector<2x128xf32>
    %341 = vector.broadcast %4 : vector<1x128xf32> to vector<2x128xf32>
    %342 = arith.addf %340, %341 : vector<2x128xf32>
    %343 = arith.negf %342 : vector<2x128xf32>
    %344 = math.exp %343 : vector<2x128xf32>
    %cst_62 = arith.constant 1.000000e+00 : f32
    %345 = vector.broadcast %cst_62 : f32 to vector<2x128xf32>
    %346 = arith.addf %345, %344 : vector<2x128xf32>
    %347 = arith.divf %345, %346 : vector<2x128xf32>
    %348 = math.tanh %342 : vector<2x128xf32>
    %349 = vector.extract_strided_slice %347 {offsets = [0, 0], sizes = [2, 32], strides = [1, 1]} : vector<2x128xf32> to vector<2x32xf32>
    %350 = vector.extract_strided_slice %347 {offsets = [0, 32], sizes = [2, 32], strides = [1, 1]} : vector<2x128xf32> to vector<2x32xf32>
    %351 = vector.extract_strided_slice %348 {offsets = [0, 64], sizes = [2, 32], strides = [1, 1]} : vector<2x128xf32> to vector<2x32xf32>
    %352 = vector.extract_strided_slice %347 {offsets = [0, 96], sizes = [2, 32], strides = [1, 1]} : vector<2x128xf32> to vector<2x32xf32>
    %353 = arith.mulf %350, %312 : vector<2x32xf32>
    %354 = arith.mulf %349, %351 : vector<2x32xf32>
    %355 = arith.addf %353, %354 : vector<2x32xf32>
    %356 = math.tanh %355 : vector<2x32xf32>
    %357 = arith.mulf %352, %356 : vector<2x32xf32>
    %358 = vector.broadcast %9 : vector<1x32xf32> to vector<2x32xf32>
    %359 = arith.mulf %357, %358 : vector<2x32xf32>
    %cst_63 = arith.constant dense<0.000000e+00> : vector<2xf32>
    %360 = vector.multi_reduction <add>, %359, %cst_63 [1] : vector<2x32xf32> to vector<2xf32>
    %361 = vector.shape_cast %360 : vector<2xf32> to vector<2x1xf32>
    %362 = tpu.concatenate %60, %103, %146, %189, %232, %275, %318, %361 in 1 : vector<2x1xf32>, vector<2x1xf32>, vector<2x1xf32>, vector<2x1xf32>, vector<2x1xf32>, vector<2x1xf32>, vector<2x1xf32>, vector<2x1xf32> -> vector<2x8xf32>
    %c0_64 = arith.constant 0 : index
    %c0_65 = arith.constant 0 : index
    %363 = vector.load %arg4[%c0_64, %c0_65] : memref<1x1xf32, #tpu.memory_space<vmem>>, vector<1x1xf32>
    %364 = vector.broadcast %363 : vector<1x1xf32> to vector<2x8xf32>
    %365 = arith.addf %362, %364 : vector<2x8xf32>
    %c0_66 = arith.constant 0 : index
    %c0_67 = arith.constant 0 : index
    %366 = vector.load %arg10[%c0_66, %c0_67] : memref<2x8xf32, #tpu.memory_space<vmem>>, vector<2x8xf32>
    tpu.vector_store %arg10[%c0_66, %c0_67], %365 {strides = array<i32>} : memref<2x8xf32, #tpu.memory_space<vmem>>, vector<2x8xf32>,
    return
  }
}

</mosaic_0001>

<bundles_post_ra>
// kernel: tpu_custom_call.1
= control target key start
LH: loop header
LB: loop body
LE: loop exit
PB: predicated region body
PF: predicated region fallthrough
CT: control target
= control target key end

     0   :  { %s2015_s0 = inlined_call_operand.vmem [shape: bf16[16,4], index: 0, kind: input, shape index: {}]   ;;  %s2016_s1 = inlined_call_operand.vmem [shape: f32[2,2,32], index: 1, kind: input, shape index: {}]   ;;  %s2017_s2 = inlined_call_operand.vmem [shape: f32[2,2,32], index: 2, kind: input, shape index: {}]   ;;  %s2018_s3 = inlined_call_operand.vmem [shape: f32[1,32], index: 3, kind: input, shape index: {}]   ;;  %s2019_s4 = inlined_call_operand.<no memory space> [shape: f32[1,1], index: 4, kind: input, shape index: {}]   ;;  %s2020_s5 = inlined_call_operand.vmem [shape: bf16[4,128], index: 5, kind: input, shape index: {}]   ;;  %s2021_s6 = inlined_call_operand.hbm [shape: bf16[32,128], index: 6, kind: input, shape index: {}]   ;;  %s2022_s7 = inlined_call_operand.vmem [shape: f32[1,128], index: 7, kind: input, shape index: {}]   ;;  %s2023_s8 = inlined_call_operand.hbm [shape: bf16[64,128], index: 8, kind: input, shape index: {}]   ;;  %s2024_s9 = inlined_call_operand.vmem [shape: f32[1,128], index: 9, kind: input, shape index: {}]   ;;  %s2025_s10 = inlined_call_operand.hbm [shape: f32[2,8], index: 10, kind: output, shape index: {}]  }
   0x1   :  { %v15_v0 = vstv %s2019_s4 }
   0x2   :  { %16 = vst [vmem:[#allocation2] sm:$0x1] %v15_v0 }
   0x3   :  { %17 = vsyncpa [#allocation4], 0 }
   0x4   :  { %18 = vsyncpa [#allocation7], 0 }
   0x5   :  { %19 = vsyncpa [#allocation5], 0  ;;  %s36_s17 = sshll.u32 %s2021_s6, 4  ;;  %s1607_s18 = smov [#allocation3]   ;;  %s37_s17 = int_to_ptr.hbm [resolvable:$true] %s36_s17 }
   0x6   :  { %s38_s19 = sshll.u32 %s1607_s18, 4  ;;  %s51_s22 = sshll.u32 %s2023_s8, 4  ;;  %s39_s19 = int_to_ptr.vmem [resolvable:$true] %s38_s19  ;;  %s52_s22 = int_to_ptr.hbm [resolvable:$true] %s51_s22 }
   0x7   :  { %s1608_s23 = smov 64   ;;  %s1609_s24 = smov 4  }
   0x8   :  { %44 = dma.hbm_to_vmem [thread:$0]  %s37_s17, 256, %s39_s19, [#allocation4], %s1608_s23, %s1608_s23, %s1609_s24  }
   0x9   :  { %s1610_s4 = smov [#allocation6]  }
   0xa   :  { %s53_s25 = sshll.u32 %s1610_s4, 4  ;;  %s54_s25 = int_to_ptr.vmem [resolvable:$true] %s53_s25 }
   0xb   :  { %59 = dma.hbm_to_vmem [thread:$0]  %s52_s22, 512, %s54_s25, [#allocation7], %s1608_s23, %s1608_s23, %s1609_s24  }
   0xc   :  { %1601 = dma.done.wait [#allocation4], 256  }
   0xd   :  { %1602 = vsyncadd [#allocation4], 4294967040 }
   0xe   :  { %1603 = dma.done.wait [#allocation7], 512  }
   0xf   :  { %1604 = vsyncadd [#allocation7], 4294966784  ;;  %vm100_vm0 = vcmask 1041408   ;;  %v71_v1 = vld [vmem:[%s2020_s5] sm:$0x3]  ;;  %v1686_v2 = vld [vmem:[#allocation3 + $0x8] sm:$0xff] }
  0x10   :  { %v102_v3 = vsel %vm100_vm0, %v71_v1, 0  ;;  %v1381_v4 = vld [vmem:[%s2015_s0] sm:$0xff]  ;;  %vm96_vm1 = vcmask 31744   ;;  %148 = vmatpush.bf16.msra.mxu1 %v1686_v2  ;;  %319 = vmatpush.bf16.msra.mxu3 %v1686_v2  ;;  %vm138_vm2 = vcmask 261120   ;;  %s1611_s12 = smov 32   ;;  %v1725_v36 = vld [vmem:[#allocation6 + $0x18] sm:$0xff] }
  0x11   :  { %v1691_v5 = vld [vmem:[#allocation3] sm:$0xff]  ;;  %111 = vmatpush.bf16.msra.mxu0 %v102_v3  ;;  %v1709_v8 = vld [vmem:[%s2022_s7] ss:$0 sm:$0xff]  ;;  %242 = vmatpush.bf16.msra.mxu2 %v1725_v36  ;;  %v1745_v44 = vld [vmem:[#allocation6] sm:$0xff]  ;;  %vm234_vm7 = vcmask 523264   ;;  %s1612_s19 = smov 96  }
  0x12   :  { %v119_v6 = vld [vmem:[%s2016_s1] sm:$0x3]  ;;  %v1317_v40 = vld [vmem:[%s2016_s1 + $0x2] sm:$0x3] }
  0x13   :  { %v125_v7 = vpack.c.bf16 %v119_v6, %v119_v6  ;;  %v122_v15 = vld [vmem:[%s2017_s2] sm:$0x3]  ;;  %v1318_v45 = vld [vmem:[%s2017_s2 + $0x2] sm:$0x3] }
  0x14   :  { %1316 = vmatmul.msk.bf16.vlgmr.msra.gmra.mxu0 %vm96_vm1, %v1381_v4  ;;  %149 = vmatpush.bf16.msra.mxu1 %v1691_v5  ;;  %v1728_v37 = vld [vmem:[#allocation6 + $0x10] sm:$0xff]  ;;  %v1733_v38 = vld [vmem:[#allocation6 + $0x8] sm:$0xff] }
  0x15   :  { %320 = vmatpush.bf16.msra.mxu3 %v1691_v5  ;;  %390 = vmatpush.bf16.msrb.mxu0 %v1725_v36  ;;  %v1772_v52 = vld [vmem:[%s2024_s9] ss:$0 sm:$0xff] }
  0x16   :  { %243 = vmatpush.bf16.msra.mxu2 %v1728_v37 }
  0x17   :  { %1327 = vmatmul.msk.bf16.vlgmr.msra.gmra.mxu1 %vm138_vm2, %v125_v7 }
  0x18   :  { %458 = vmatpush.bf16.msrb.mxu1 %v1686_v2 }
  0x19   :  { %529 = vmatpush.bf16.msrb.mxu3 %v1725_v36  ;;  %391 = vmatpush.bf16.msrb.mxu0 %v1728_v37 }
  0x1a   :  { %244 = vmatpush.bf16.msra.mxu2 %v1733_v38 }
  0x1c   :  { %459 = vmatpush.bf16.msrb.mxu1 %v1691_v5 }
  0x1d   :  { %530 = vmatpush.bf16.msrb.mxu3 %v1728_v37  ;;  %392 = vmatpush.bf16.msrb.mxu0 %v1733_v38 }
  0x1e   :  { %245 = vmatpush.bf16.msra.mxu2 %v1745_v44 }
  0x20   :  { %736 = vmatpush.bf16.msra.mxu1 %v1686_v2 }
  0x21   :  { %531 = vmatpush.bf16.msrb.mxu3 %v1733_v38  ;;  %393 = vmatpush.bf16.msrb.mxu0 %v1745_v44 }
  0x22   :  { %597 = vmatpush.bf16.msrb.mxu2 %v1686_v2 }
  0x24   :  { %737 = vmatpush.bf16.msra.mxu1 %v1691_v5 }
  0x25   :  { %532 = vmatpush.bf16.msrb.mxu3 %v1745_v44  ;;  %668 = vmatpush.bf16.msra.mxu0 %v1725_v36 }
  0x26   :  { %598 = vmatpush.bf16.msrb.mxu2 %v1691_v5 }
  0x29   :  { %669 = vmatpush.bf16.msra.mxu0 %v1728_v37 }
  0x2d   :  { %670 = vmatpush.bf16.msra.mxu0 %v1733_v38 }
  0x31   :  { %671 = vmatpush.bf16.msra.mxu0 %v1745_v44 }
  0x91   :  { %v113_v9 = vpop.f32.mrf.mxu0 }
  0x92   :  { %v1712_v10 = vadd.f32 %v1709_v8, %v113_v9 }
  0x94   :  { %v151_v11 = vpop.f32.mrf.mxu1 }
  0x95   :  { %v155_v12 = vadd.f32 %v151_v11, %v1712_v10 }
  0x97   :  { %1400 = vtanh.f32 %v155_v12  ;;  %v1328_v16 = vmul.f32 -1.442695, %v155_v12 }
  0x99   :  { %1402 = vpow2.f32 %v1328_v16 }
  0x9c   :  { %v153_v13 = vpop.f32.mrf.mxu1 }
  0x9d   :  { %v1401_v14 = vpop.eup %1400 }
  0x9e   :  { %182 = vrot.lane.b32.xlu0 %v1401_v14, %s1608_s23 }
  0x9f   :  { %v1403_v17 = vpop.eup %1402 }
  0xa0   :  { %v159_v18 = vadd.f32 1.0, %v1403_v17 }
  0xa2   :  { %1404 = vrcp.f32 %v159_v18  ;;  %v171_v24 = vand.u32 2147483648, %v159_v18  ;;  %vm165_vm4 = vweird.f32 %v159_v18  ;;  %v169_v25 = vand.u32 2147483647, %v159_v18 }
  0xa4   :  { %v172_v27 = vor.u32 1.1754944e-38, %v171_v24  ;;  %vm170_vm6 = vcmp.eq.f32.partialorder %v169_v25, 8.507059e+37 }
  0xa6   :  { %177 = vrot.lane.b32.xlu0 %v122_v15, %s1611_s12 }
  0xa8   :  { %v1405_v19 = vpop.eup %1404 }
  0xa9   :  { %v161_v20 = vmul.f32 %v1405_v19, %v159_v18  ;;  %vm166_vm3 = vweird.f32 %v1405_v19 }
  0xaa   :  { %vm167_vm5 = vmor %vm165_vm4, %vm166_vm3 }
  0xab   :  { %v162_v21 = vsub.f32 1.0, %v161_v20 }
  0xad   :  { %v163_v22 = vmul.f32 %v1405_v19, %v162_v21 }
  0xaf   :  { %v164_v23 = vadd.f32 %v1405_v19, %v163_v22 }
  0xb1   :  { %v168_v26 = vsel %vm167_vm5, %v1405_v19, %v164_v23 }
  0xb2   :  { %v173_v29 = vsel %vm170_vm6, %v172_v27, %v168_v26 }
 0x110   :  { %v183_v28 = vpop.permute.xlu0 %182 }
 0x111   :  { %v185_v30 = vmul.f32 %v183_v28, %v173_v29 }
 0x113   :  { %187 = vrot.lane.b32.xlu1 %v185_v30, %s1611_s12 }
 0x118   :  { %v178_v31 = vpop.permute.xlu0 %177 }
 0x119   :  { %v180_v32 = vmul.f32 %v178_v31, %v173_v29 }
 0x185   :  { %v188_v33 = vpop.permute.xlu1 %187 }
 0x186   :  { %v1721_v34 = vadd.f32 %v188_v33, %v180_v32 }
 0x188   :  { %1406 = vtanh.f32 %v1721_v34 }
 0x18e   :  { %v1407_v35 = vpop.eup %1406 }
 0x18f   :  { %193 = vrot.lane.b32.xlu1 %v1407_v35, %s1608_s23 }
 0x201   :  { %v194_v39 = vpop.permute.xlu1 %193 }
 0x202   :  { %v196_v41 = vmul.f32 %v194_v39, %v173_v29 }
 0x204   :  { %v1390_v42 = vpack.i.bf16 %v1317_v40, %v196_v41  ;;  %v306_v43 = vpack.c.bf16 %v196_v41, %v196_v41  ;;  %v351_v40 = vrot.slane %v1721_v34, 6 }
 0x206   :  { %1391 = vrot.lane.b32.xlu2 %v1390_v42, %s1611_s12 }
 0x20e   :  { %308 = vrot.lane.b32.xlu2 %v306_v43, %s1611_s12 }
 0x216   :  { %272 = vrot.lane.b32.xlu2 %v1318_v45, %s1611_s12 }
 0x260   :  { %v1392_v46 = vpop.permute.xlu2 %1391 }
 0x261   :  { %v1394_v47 = vunpack.i.h.bf16 %v1392_v46  ;;  %v1393_v48 = vunpack.i.l.bf16 %v1392_v46 }
 0x263   :  { %v205_v49 = vsel %vm138_vm2, %v1393_v48, %v1394_v47 }
 0x264   :  { %v206_v50 = vpack.c.bf16 %v205_v49, %v205_v49 }
 0x266   :  { %1345 = vmatmul.msk.bf16.vlgmr.msra.gmra.mxu2 %vm234_vm7, %v206_v50 }
 0x267   :  { %868 = vmatpush.bf16.msra.mxu2 %v1686_v2 }
 0x268   :  { %v309_v51 = vpop.permute.xlu2 %308 }
 0x269   :  { %1347 = vmatmul.msk.bf16.vlgmr.msra.gmra.mxu3 %vm138_vm2, %v309_v51 }
 0x26a   :  { %801 = vmatpush.bf16.msra.mxu3 %v1725_v36 }
 0x26b   :  { %869 = vmatpush.bf16.msra.mxu2 %v1691_v5 }
 0x26e   :  { %802 = vmatpush.bf16.msra.mxu3 %v1728_v37 }
 0x270   :  { %v273_v32 = vpop.permute.xlu2 %272 }
 0x272   :  { %803 = vmatpush.bf16.msra.mxu3 %v1733_v38 }
 0x276   :  { %804 = vmatpush.bf16.msra.mxu3 %v1745_v44 }
 0x2e9   :  { %v247_v53 = vpop.f32.mrf.mxu2 }
 0x2ea   :  { %v248_v54 = vadd.f32 %v1772_v52, %v247_v53 }
 0x2ec   :  { %1408 = vtanh.f32 %v248_v54  ;;  %v322_v55 = vpop.f32.mrf.mxu3  ;;  %v1346_v62 = vmul.f32 -1.442695, %v248_v54 }
 0x2ed   :  { %v327_v56 = vrot.slane %v322_v55, 6 }
 0x2ef   :  { %v329_v57 = vadd.f32 %v327_v56, %v1712_v10 }
 0x2f1   :  { %1410 = vtanh.f32 %v329_v57  ;;  %v249_v58 = vpop.f32.mrf.mxu2  ;;  %v1348_v63 = vmul.f32 -1.442695, %v329_v57 }
 0x2f2   :  { %v1409_v59 = vpop.eup %1408  ;;  %1412 = vpow2.f32 %v1346_v62 }
 0x2f3   :  { %277 = vrot.lane.b32.xlu0 %v1409_v59, %s1608_s23  ;;  %1414 = vpow2.f32 %v1348_v63 }
 0x2f4   :  { %v324_v60 = vpop.f32.mrf.mxu3 }
 0x2f5   :  { %v1804_v60 = vpop.f32.mrf.mxu0 }
 0x2f7   :  { %v1411_v61 = vpop.eup %1410 }
 0x2f8   :  { %355 = vrot.lane.b32.xlu1 %v1411_v61, %s1608_s23  ;;  %v1413_v0 = vpop.eup %1412 }
 0x2f9   :  { %v254_v1 = vadd.f32 1.0, %v1413_v0  ;;  %v1415_v3 = vpop.eup %1414 }
 0x2fa   :  { %v333_v4 = vadd.f32 1.0, %v1415_v3 }
 0x2fb   :  { %1416 = vrcp.f32 %v254_v1  ;;  %v266_v16 = vand.u32 2147483648, %v254_v1  ;;  %vm260_vm9 = vweird.f32 %v254_v1  ;;  %v264_v18 = vand.u32 2147483647, %v254_v1 }
 0x2fc   :  { %1418 = vrcp.f32 %v333_v4  ;;  %v345_v22 = vand.u32 2147483648, %v333_v4  ;;  %vm339_vm13 = vweird.f32 %v333_v4  ;;  %v343_v25 = vand.u32 2147483647, %v333_v4 }
 0x2fd   :  { %v267_v20 = vor.u32 1.1754944e-38, %v266_v16  ;;  %vm265_vm12 = vcmp.eq.f32.partialorder %v264_v18, 8.507059e+37 }
 0x2fe   :  { %v346_v28 = vor.u32 1.1754944e-38, %v345_v22  ;;  %vm344_vm15 = vcmp.eq.f32.partialorder %v343_v25, 8.507059e+37 }
 0x301   :  { %v1417_v6 = vpop.eup %1416 }
 0x302   :  { %v256_v7 = vmul.f32 %v1417_v6, %v254_v1  ;;  %v1419_v9 = vpop.eup %1418  ;;  %vm261_vm8 = vweird.f32 %v1417_v6 }
 0x303   :  { %v335_v12 = vmul.f32 %v1419_v9, %v333_v4  ;;  %vm262_vm10 = vmor %vm260_vm9, %vm261_vm8  ;;  %vm340_vm11 = vweird.f32 %v1419_v9 }
 0x304   :  { %v257_v11 = vsub.f32 1.0, %v256_v7  ;;  %vm341_vm14 = vmor %vm339_vm13, %vm340_vm11 }
 0x305   :  { %v336_v14 = vsub.f32 1.0, %v335_v12 }
 0x306   :  { %v258_v13 = vmul.f32 %v1417_v6, %v257_v11 }
 0x307   :  { %v337_v17 = vmul.f32 %v1419_v9, %v336_v14 }
 0x308   :  { %v259_v15 = vadd.f32 %v1417_v6, %v258_v13 }
 0x309   :  { %v338_v21 = vadd.f32 %v1419_v9, %v337_v17 }
 0x30a   :  { %v263_v19 = vsel %vm262_vm10, %v1417_v6, %v259_v15 }
 0x30b   :  { %v268_v23 = vsel %vm265_vm12, %v267_v20, %v263_v19  ;;  %v342_v27 = vsel %vm341_vm14, %v1419_v9, %v338_v21 }
 0x30c   :  { %v347_v30 = vsel %vm344_vm15, %v346_v28, %v342_v27  ;;  %v275_v33 = vmul.f32 %v273_v32, %v268_v23 }
 0x30d   :  { %v353_v41 = vmul.f32 %v351_v40, %v347_v30 }
 0x365   :  { %v278_v24 = vpop.permute.xlu0 %277 }
 0x366   :  { %v280_v26 = vmul.f32 %v278_v24, %v268_v23 }
 0x368   :  { %282 = vrot.lane.b32.xlu0 %v280_v26, %s1611_s12 }
 0x36a   :  { %v356_v29 = vpop.permute.xlu1 %355 }
 0x36b   :  { %v358_v31 = vmul.f32 %v356_v29, %v347_v30 }
 0x36d   :  { %360 = vrot.lane.b32.xlu1 %v358_v31, %s1611_s12 }
 0x3da   :  { %v283_v35 = vpop.permute.xlu0 %282 }
 0x3db   :  { %v1780_v39 = vadd.f32 %v283_v35, %v275_v33 }
 0x3dd   :  { %1420 = vtanh.f32 %v1780_v39 }
 0x3df   :  { %v361_v42 = vpop.permute.xlu1 %360 }
 0x3e0   :  { %v1784_v43 = vadd.f32 %v361_v42, %v353_v41 }
 0x3e2   :  { %1422 = vtanh.f32 %v1784_v43 }
 0x3e3   :  { %v1421_v45 = vpop.eup %1420 }
 0x3e4   :  { %288 = vrot.lane.b32.xlu2 %v1421_v45, %s1608_s23 }
 0x3e8   :  { %v1423_v46 = vpop.eup %1422 }
 0x3e9   :  { %366 = vrot.lane.b32.xlu0 %v1423_v46, %s1608_s23 }
 0x43e   :  { %v289_v47 = vpop.permute.xlu2 %288 }
 0x43f   :  { %v1789_v48 = vmul.f32 %v289_v47, %v268_v23  ;;  %v490_v47 = vrot.slane %v1784_v43, 6 }
 0x441   :  { %v375_v49 = vrot.slane %v1789_v48, 6 }
 0x443   :  { %376 = vrot.lane.b32.xlu2 %v375_v49, %s1608_s23 }
 0x45b   :  { %v367_v34 = vpop.permute.xlu0 %366 }
 0x45c   :  { %v369_v50 = vmul.f32 %v367_v34, %v347_v30 }
 0x45e   :  { %v444_v51 = vpack.c.bf16 %v369_v50, %v369_v50  ;;  %371 = vrot.lane.b32.xlu1 %v369_v50, %s1611_s12 }
 0x460   :  { %v446_v53 = vrot.slane %v444_v51, 1 }
 0x462   :  { %447 = vrot.lane.b32.xlu0 %v446_v53, %s1611_s12 }
 0x49d   :  { %v377_v54 = vpop.permute.xlu2 %376 }
 0x4d0   :  { %v372_v55 = vpop.permute.xlu1 %371 }
 0x4d1   :  { %v379_v56 = vsel %vm138_vm2, %v372_v55, %v377_v54 }
 0x4d2   :  { %v380_v57 = vpack.c.bf16 %v379_v56, %v379_v56 }
 0x4d4   :  { %v382_v58 = vrot.slane %v380_v57, 1  ;;  %v448_v59 = vpop.permute.xlu0 %447 }
 0x4d5   :  { %1351 = vmatmul.msk.bf16.vlgmr.msrb.gmra.mxu1 %vm138_vm2, %v448_v59 }
 0x4d6   :  { %1349 = vmatmul.msk.bf16.vlgmr.msrb.gmra.mxu0 %vm234_vm7, %v382_v58  ;;  %1007 = vmatpush.bf16.msrb.mxu1 %v1686_v2 }
 0x4d7   :  { %939 = vmatpush.bf16.msrb.mxu0 %v1725_v36 }
 0x4da   :  { %1008 = vmatpush.bf16.msrb.mxu1 %v1691_v5 }
 0x4db   :  { %940 = vmatpush.bf16.msrb.mxu0 %v1728_v37 }
 0x4df   :  { %941 = vmatpush.bf16.msrb.mxu0 %v1733_v38 }
 0x4e3   :  { %942 = vmatpush.bf16.msrb.mxu0 %v1745_v44 }
 0x552   :  { %v461_v61 = vpop.f32.mrf.mxu1 }
 0x553   :  { %v466_v62 = vrot.slane %v461_v61, 4  ;;  %v395_v63 = vpop.f32.mrf.mxu0 }
 0x554   :  { %v396_v0 = vadd.f32 %v1772_v52, %v395_v63 }
 0x555   :  { %v468_v1 = vadd.f32 %v466_v62, %v1712_v10 }
 0x556   :  { %1424 = vtanh.f32 %v396_v0  ;;  %v1350_v14 = vmul.f32 -1.442695, %v396_v0 }
 0x557   :  { %1426 = vtanh.f32 %v468_v1  ;;  %v1352_v9 = vmul.f32 -1.442695, %v468_v1 }
 0x559   :  { %1428 = vpow2.f32 %v1352_v9 }
 0x55a   :  { %v463_v3 = vpop.f32.mrf.mxu1 }
 0x55b   :  { %v397_v4 = vpop.f32.mrf.mxu0 }
 0x55c   :  { %v1425_v6 = vpop.eup %1424 }
 0x55d   :  { %v1427_v7 = vpop.eup %1426  ;;  %421 = vrot.lane.b32.xlu1 %v1425_v6, %s1608_s23 }
 0x55e   :  { %494 = vrot.lane.b32.xlu2 %v1427_v7, %s1608_s23 }
 0x55f   :  { %v1429_v11 = vpop.eup %1428 }
 0x560   :  { %v472_v12 = vadd.f32 1.0, %v1429_v11 }
 0x562   :  { %1430 = vrcp.f32 %v472_v12  ;;  %v484_v21 = vand.u32 2147483648, %v472_v12  ;;  %vm478_vm3 = vweird.f32 %v472_v12  ;;  %v482_v22 = vand.u32 2147483647, %v472_v12 }
 0x563   :  { %1432 = vpow2.f32 %v1350_v14 }
 0x564   :  { %v485_v24 = vor.u32 1.1754944e-38, %v484_v21  ;;  %vm483_vm5 = vcmp.eq.f32.partialorder %v482_v22, 8.507059e+37 }
 0x568   :  { %v1431_v13 = vpop.eup %1430 }
 0x569   :  { %v474_v15 = vmul.f32 %v1431_v13, %v472_v12  ;;  %v1433_v17 = vpop.eup %1432  ;;  %vm479_vm0 = vweird.f32 %v1431_v13 }
 0x56a   :  { %v402_v19 = vadd.f32 1.0, %v1433_v17  ;;  %vm480_vm4 = vmor %vm478_vm3, %vm479_vm0 }
 0x56b   :  { %v475_v16 = vsub.f32 1.0, %v474_v15 }
 0x56c   :  { %1434 = vrcp.f32 %v402_v19  ;;  %v414_v33 = vand.u32 2147483648, %v402_v19  ;;  %vm408_vm8 = vweird.f32 %v402_v19  ;;  %v412_v35 = vand.u32 2147483647, %v402_v19 }
 0x56d   :  { %v476_v18 = vmul.f32 %v1431_v13, %v475_v16 }
 0x56e   :  { %v415_v41 = vor.u32 1.1754944e-38, %v414_v33  ;;  %vm413_vm10 = vcmp.eq.f32.partialorder %v412_v35, 8.507059e+37 }
 0x56f   :  { %v477_v20 = vadd.f32 %v1431_v13, %v476_v18 }
 0x571   :  { %v481_v23 = vsel %vm480_vm4, %v1431_v13, %v477_v20 }
 0x572   :  { %v486_v25 = vsel %vm483_vm5, %v485_v24, %v481_v23  ;;  %v1435_v27 = vpop.eup %1434 }
 0x573   :  { %v404_v29 = vmul.f32 %v1435_v27, %v402_v19  ;;  %vm409_vm6 = vweird.f32 %v1435_v27  ;;  %v492_v49 = vmul.f32 %v490_v47, %v486_v25 }
 0x574   :  { %vm410_vm9 = vmor %vm408_vm8, %vm409_vm6 }
 0x575   :  { %v405_v30 = vsub.f32 1.0, %v404_v29 }
 0x577   :  { %v406_v31 = vmul.f32 %v1435_v27, %v405_v30 }
 0x579   :  { %v407_v32 = vadd.f32 %v1435_v27, %v406_v31 }
 0x57b   :  { %v411_v40 = vsel %vm410_vm9, %v1435_v27, %v407_v32 }
 0x57c   :  { %v416_v45 = vsel %vm413_vm10, %v415_v41, %v411_v40 }
 0x57d   :  { %v419_v53 = vmul.f32 %v416_v45, %v1780_v39 }
 0x5b8   :  { %v495_v26 = vpop.permute.xlu2 %494 }
 0x5b9   :  { %v497_v28 = vmul.f32 %v495_v26, %v486_v25 }
 0x5bb   :  { %499 = vrot.lane.b32.xlu1 %v497_v28, %s1611_s12 }
 0x5cf   :  { %v422_v42 = vpop.permute.xlu1 %421 }
 0x5d0   :  { %v424_v46 = vmul.f32 %v422_v42, %v416_v45 }
 0x5d2   :  { %426 = vrot.lane.b32.xlu0 %v424_v46, %s1611_s12 }
 0x62d   :  { %v500_v34 = vpop.permute.xlu1 %499 }
 0x62e   :  { %v1813_v50 = vadd.f32 %v500_v34, %v492_v49 }
 0x630   :  { %1436 = vtanh.f32 %v1813_v50 }
 0x636   :  { %v1437_v51 = vpop.eup %1436 }
 0x637   :  { %505 = vrot.lane.b32.xlu0 %v1437_v51, %s1608_s23 }
 0x644   :  { %v427_v54 = vpop.permute.xlu0 %426 }
 0x645   :  { %v1818_v55 = vadd.f32 %v427_v54, %v419_v53  ;;  %v629_v54 = vrot.slane %v1813_v50, 6 }
 0x647   :  { %1438 = vtanh.f32 %v1818_v55 }
 0x64d   :  { %v1439_v56 = vpop.eup %1438 }
 0x64e   :  { %432 = vrot.lane.b32.xlu2 %v1439_v56, %s1608_s23 }
 0x6a8   :  { %v433_v43 = vpop.permute.xlu2 %432 }
 0x6a9   :  { %v1822_v57 = vmul.f32 %v433_v43, %v416_v45  ;;  %v506_v58 = vpop.permute.xlu0 %505 }
 0x6aa   :  { %v508_v59 = vmul.f32 %v506_v58, %v486_v25 }
 0x6ab   :  { %v514_v61 = vrot.slane %v1822_v57, 4 }
 0x6ac   :  { %v583_v62 = vpack.c.bf16 %v508_v59, %v508_v59  ;;  %510 = vrot.lane.b32.xlu1 %v508_v59, %s1611_s12 }
 0x6ad   :  { %515 = vrot.lane.b32.xlu2 %v514_v61, %s1608_s23 }
 0x6ae   :  { %v585_v39 = vrot.slane %v583_v62, 2 }
 0x6b0   :  { %586 = vrot.lane.b32.xlu0 %v585_v39, %s1611_s12 }
 0x707   :  { %v516_v63 = vpop.permute.xlu2 %515 }
 0x71e   :  { %v511_v0 = vpop.permute.xlu1 %510 }
 0x71f   :  { %v518_v1 = vsel %vm138_vm2, %v511_v0, %v516_v63 }
 0x720   :  { %v519_v3 = vpack.c.bf16 %v518_v1, %v518_v1 }
 0x722   :  { %v521_v4 = vrot.slane %v519_v3, 2  ;;  %v587_v6 = vpop.permute.xlu0 %586 }
 0x723   :  { %1355 = vmatmul.msk.bf16.vlgmr.msrb.gmra.mxu2 %vm138_vm2, %v587_v6 }
 0x724   :  { %1353 = vmatmul.msk.bf16.vlgmr.msrb.gmra.mxu3 %vm234_vm7, %v521_v4  ;;  %1146 = vmatpush.bf16.msrb.mxu2 %v1686_v2 }
 0x725   :  { %1078 = vmatpush.bf16.msrb.mxu3 %v1725_v36 }
 0x728   :  { %1147 = vmatpush.bf16.msrb.mxu2 %v1691_v5 }
 0x729   :  { %1079 = vmatpush.bf16.msrb.mxu3 %v1728_v37 }
 0x72d   :  { %1080 = vmatpush.bf16.msrb.mxu3 %v1733_v38 }
 0x731   :  { %1081 = vmatpush.bf16.msrb.mxu3 %v1745_v44 }
 0x7a6   :  { %v600_v7 = vpop.f32.mrf.mxu2 }
 0x7a7   :  { %v605_v9 = vrot.slane %v600_v7, 2  ;;  %v534_v11 = vpop.f32.mrf.mxu3 }
 0x7a8   :  { %v535_v12 = vadd.f32 %v1772_v52, %v534_v11 }
 0x7a9   :  { %v607_v13 = vadd.f32 %v605_v9, %v1712_v10 }
 0x7aa   :  { %1440 = vtanh.f32 %v535_v12  ;;  %v1354_v20 = vmul.f32 -1.442695, %v535_v12 }
 0x7ab   :  { %1442 = vtanh.f32 %v607_v13  ;;  %v1356_v5 = vmul.f32 -1.442695, %v607_v13 }
 0x7ad   :  { %1444 = vpow2.f32 %v1356_v5 }
 0x7ae   :  { %v602_v2 = vpop.f32.mrf.mxu2 }
 0x7af   :  { %v536_v14 = vpop.f32.mrf.mxu3 }
 0x7b0   :  { %v1441_v15 = vpop.eup %1440  ;;  %v1868_v14 = vadd.f32 %v1709_v8, %v1804_v60 }
 0x7b1   :  { %v1443_v16 = vpop.eup %1442  ;;  %560 = vrot.lane.b32.xlu1 %v1441_v15, %s1608_s23 }
 0x7b2   :  { %633 = vrot.lane.b32.xlu2 %v1443_v16, %s1608_s23 }
 0x7b3   :  { %v1445_v17 = vpop.eup %1444 }
 0x7b4   :  { %v611_v18 = vadd.f32 1.0, %v1445_v17 }
 0x7b6   :  { %1446 = vrcp.f32 %v611_v18  ;;  %v623_v26 = vand.u32 2147483648, %v611_v18  ;;  %vm617_vm12 = vweird.f32 %v611_v18  ;;  %v621_v27 = vand.u32 2147483647, %v611_v18 }
 0x7b7   :  { %1448 = vpow2.f32 %v1354_v20 }
 0x7b8   :  { %v624_v29 = vor.u32 1.1754944e-38, %v623_v26  ;;  %vm622_vm14 = vcmp.eq.f32.partialorder %v621_v27, 8.507059e+37 }
 0x7bc   :  { %v1447_v19 = vpop.eup %1446 }
 0x7bd   :  { %v613_v21 = vmul.f32 %v1447_v19, %v611_v18  ;;  %v1449_v22 = vpop.eup %1448  ;;  %vm618_vm11 = vweird.f32 %v1447_v19 }
 0x7be   :  { %v541_v24 = vadd.f32 1.0, %v1449_v22  ;;  %vm619_vm13 = vmor %vm617_vm12, %vm618_vm11 }
 0x7bf   :  { %v614_v10 = vsub.f32 1.0, %v613_v21 }
 0x7c0   :  { %1450 = vrcp.f32 %v541_v24  ;;  %v553_v45 = vand.u32 2147483648, %v541_v24  ;;  %vm547_vm0 = vweird.f32 %v541_v24  ;;  %v551_v46 = vand.u32 2147483647, %v541_v24 }
 0x7c1   :  { %v615_v23 = vmul.f32 %v1447_v19, %v614_v10 }
 0x7c2   :  { %v554_v49 = vor.u32 1.1754944e-38, %v553_v45  ;;  %vm552_vm4 = vcmp.eq.f32.partialorder %v551_v46, 8.507059e+37 }
 0x7c3   :  { %v616_v25 = vadd.f32 %v1447_v19, %v615_v23 }
 0x7c5   :  { %v620_v28 = vsel %vm619_vm13, %v1447_v19, %v616_v25 }
 0x7c6   :  { %v625_v30 = vsel %vm622_vm14, %v624_v29, %v620_v28  ;;  %v1451_v32 = vpop.eup %1450 }
 0x7c7   :  { %v543_v35 = vmul.f32 %v1451_v32, %v541_v24  ;;  %vm548_vm15 = vweird.f32 %v1451_v32  ;;  %v631_v56 = vmul.f32 %v629_v54, %v625_v30 }
 0x7c8   :  { %vm549_vm3 = vmor %vm547_vm0, %vm548_vm15 }
 0x7c9   :  { %v544_v40 = vsub.f32 1.0, %v543_v35 }
 0x7cb   :  { %v545_v41 = vmul.f32 %v1451_v32, %v544_v40 }
 0x7cd   :  { %v546_v42 = vadd.f32 %v1451_v32, %v545_v41 }
 0x7cf   :  { %v550_v47 = vsel %vm549_vm3, %v1451_v32, %v546_v42 }
 0x7d0   :  { %v555_v51 = vsel %vm552_vm4, %v554_v49, %v550_v47 }
 0x7d1   :  { %v558_v61 = vmul.f32 %v555_v51, %v1818_v55 }
 0x80c   :  { %v634_v31 = vpop.permute.xlu2 %633 }
 0x80d   :  { %v636_v33 = vmul.f32 %v634_v31, %v625_v30 }
 0x80f   :  { %638 = vrot.lane.b32.xlu1 %v636_v33, %s1611_s12 }
 0x823   :  { %v561_v34 = vpop.permute.xlu1 %560 }
 0x824   :  { %v563_v53 = vmul.f32 %v561_v34, %v555_v51 }
 0x826   :  { %565 = vrot.lane.b32.xlu0 %v563_v53, %s1611_s12 }
 0x881   :  { %v639_v43 = vpop.permute.xlu1 %638 }
 0x882   :  { %v1844_v58 = vadd.f32 %v639_v43, %v631_v56 }
 0x884   :  { %1452 = vtanh.f32 %v1844_v58  ;;  %v765_v54 = vrot.slane %v1844_v58, 6 }
 0x88a   :  { %v1453_v59 = vpop.eup %1452 }
 0x88b   :  { %644 = vrot.lane.b32.xlu0 %v1453_v59, %s1608_s23 }
 0x898   :  { %v566_v62 = vpop.permute.xlu0 %565 }
 0x899   :  { %v1849_v39 = vadd.f32 %v566_v62, %v558_v61 }
 0x89b   :  { %1454 = vtanh.f32 %v1849_v39 }
 0x8a1   :  { %v1455_v63 = vpop.eup %1454 }
 0x8a2   :  { %571 = vrot.lane.b32.xlu2 %v1455_v63, %s1608_s23 }
 0x8fc   :  { %v572_v50 = vpop.permute.xlu2 %571 }
 0x8fd   :  { %v1853_v0 = vmul.f32 %v572_v50, %v555_v51  ;;  %v645_v1 = vpop.permute.xlu0 %644 }
 0x8fe   :  { %v647_v3 = vmul.f32 %v645_v1, %v625_v30 }
 0x8ff   :  { %v653_v4 = vrot.slane %v1853_v0, 2 }
 0x900   :  { %v722_v6 = vpack.c.bf16 %v647_v3, %v647_v3  ;;  %649 = vrot.lane.b32.xlu1 %v647_v3, %s1611_s12 }
 0x901   :  { %654 = vrot.lane.b32.xlu2 %v653_v4, %s1608_s23 }
 0x902   :  { %v724_v55 = vrot.slane %v722_v6, 3 }
 0x904   :  { %725 = vrot.lane.b32.xlu0 %v724_v55, %s1611_s12 }
 0x95b   :  { %v655_v7 = vpop.permute.xlu2 %654 }
 0x972   :  { %v650_v9 = vpop.permute.xlu1 %649 }
 0x973   :  { %v657_v11 = vsel %vm138_vm2, %v650_v9, %v655_v7 }
 0x974   :  { %v658_v12 = vpack.c.bf16 %v657_v11, %v657_v11 }
 0x976   :  { %v660_v13 = vrot.slane %v658_v12, 3  ;;  %v726_v2 = vpop.permute.xlu0 %725 }
 0x977   :  { %1359 = vmatmul.msk.bf16.vlgmr.msra.gmra.mxu1 %vm138_vm2, %v726_v2 }
 0x978   :  { %1357 = vmatmul.msk.bf16.vlgmr.msra.gmra.mxu0 %vm234_vm7, %v660_v13 }
 0x979   :  { %1217 = vmatpush.bf16.msra.mxu0 %v1725_v36 }
 0x97d   :  { %1218 = vmatpush.bf16.msra.mxu0 %v1728_v37 }
 0x981   :  { %1219 = vmatpush.bf16.msra.mxu0 %v1733_v38 }
 0x985   :  { %1220 = vmatpush.bf16.msra.mxu0 %v1745_v44 }
 0x9f4   :  { %v739_v15 = vpop.f32.mrf.mxu1 }
 0x9f5   :  { %v743_v16 = vadd.f32 %v739_v15, %v1868_v14  ;;  %v673_v5 = vpop.f32.mrf.mxu0 }
 0x9f6   :  { %v674_v17 = vadd.f32 %v1772_v52, %v673_v5 }
 0x9f7   :  { %1456 = vtanh.f32 %v743_v16  ;;  %v1360_v38 = vmul.f32 -1.442695, %v743_v16 }
 0x9f8   :  { %1458 = vtanh.f32 %v674_v17  ;;  %v1358_v20 = vmul.f32 -1.442695, %v674_v17 }
 0x9f9   :  { %1460 = vpow2.f32 %v1360_v38 }
 0x9fc   :  { %v741_v18 = vpop.f32.mrf.mxu1 }
 0x9fd   :  { %v1457_v36 = vpop.eup %1456  ;;  %v675_v19 = vpop.f32.mrf.mxu0 }
 0x9fe   :  { %v1459_v37 = vpop.eup %1458  ;;  %769 = vrot.lane.b32.xlu2 %v1457_v36, %s1608_s23 }
 0x9ff   :  { %699 = vrot.lane.b32.xlu1 %v1459_v37, %s1608_s23  ;;  %v1461_v8 = vpop.eup %1460 }
 0xa00   :  { %v747_v44 = vadd.f32 1.0, %v1461_v8 }
 0xa02   :  { %1462 = vrcp.f32 %v747_v44  ;;  %v759_v26 = vand.u32 2147483648, %v747_v44  ;;  %vm753_vm6 = vweird.f32 %v747_v44  ;;  %v757_v27 = vand.u32 2147483647, %v747_v44 }
 0xa03   :  { %1464 = vpow2.f32 %v1358_v20 }
 0xa04   :  { %v760_v29 = vor.u32 1.1754944e-38, %v759_v26  ;;  %vm758_vm9 = vcmp.eq.f32.partialorder %v757_v27, 8.507059e+37 }
 0xa08   :  { %v1463_v60 = vpop.eup %1462 }
 0xa09   :  { %v749_v21 = vmul.f32 %v1463_v60, %v747_v44  ;;  %v1465_v23 = vpop.eup %1464  ;;  %vm754_vm5 = vweird.f32 %v1463_v60 }
 0xa0a   :  { %v680_v24 = vadd.f32 1.0, %v1465_v23  ;;  %vm755_vm8 = vmor %vm753_vm6, %vm754_vm5 }
 0xa0b   :  { %v750_v10 = vsub.f32 1.0, %v749_v21 }
 0xa0c   :  { %1466 = vrcp.f32 %v680_v24  ;;  %v692_v45 = vand.u32 2147483648, %v680_v24  ;;  %vm686_vm11 = vweird.f32 %v680_v24  ;;  %v690_v46 = vand.u32 2147483647, %v680_v24 }
 0xa0d   :  { %v751_v22 = vmul.f32 %v1463_v60, %v750_v10 }
 0xa0e   :  { %v693_v49 = vor.u32 1.1754944e-38, %v692_v45  ;;  %vm691_vm13 = vcmp.eq.f32.partialorder %v690_v46, 8.507059e+37 }
 0xa0f   :  { %v752_v25 = vadd.f32 %v1463_v60, %v751_v22 }
 0xa11   :  { %v756_v28 = vsel %vm755_vm8, %v1463_v60, %v752_v25 }
 0xa12   :  { %v761_v30 = vsel %vm758_vm9, %v760_v29, %v756_v28  ;;  %v1467_v33 = vpop.eup %1466 }
 0xa13   :  { %v682_v35 = vmul.f32 %v1467_v33, %v680_v24  ;;  %vm687_vm10 = vweird.f32 %v1467_v33  ;;  %v767_v56 = vmul.f32 %v765_v54, %v761_v30 }
 0xa14   :  { %vm688_vm12 = vmor %vm686_vm11, %vm687_vm10 }
 0xa15   :  { %v683_v40 = vsub.f32 1.0, %v682_v35 }
 0xa17   :  { %v684_v41 = vmul.f32 %v1467_v33, %v683_v40 }
 0xa19   :  { %v685_v42 = vadd.f32 %v1467_v33, %v684_v41 }
 0xa1b   :  { %v689_v47 = vsel %vm688_vm12, %v1467_v33, %v685_v42 }
 0xa1c   :  { %v694_v51 = vsel %vm691_vm13, %v693_v49, %v689_v47 }
 0xa1d   :  { %v697_v62 = vmul.f32 %v694_v51, %v1849_v39 }
 0xa58   :  { %v770_v31 = vpop.permute.xlu2 %769 }
 0xa59   :  { %v772_v32 = vmul.f32 %v770_v31, %v761_v30 }
 0xa5b   :  { %774 = vrot.lane.b32.xlu1 %v772_v32, %s1611_s12 }
 0xa71   :  { %v700_v34 = vpop.permute.xlu1 %699 }
 0xa72   :  { %v702_v53 = vmul.f32 %v700_v34, %v694_v51 }
 0xa74   :  { %704 = vrot.lane.b32.xlu0 %v702_v53, %s1611_s12 }
 0xacd   :  { %v775_v43 = vpop.permute.xlu1 %774 }
 0xace   :  { %v1877_v59 = vadd.f32 %v775_v43, %v767_v56 }
 0xad0   :  { %1468 = vtanh.f32 %v1877_v59  ;;  %v900_v53 = vrot.slane %v1877_v59, 6 }
 0xad6   :  { %v1469_v61 = vpop.eup %1468 }
 0xad7   :  { %780 = vrot.lane.b32.xlu0 %v1469_v61, %s1608_s23 }
 0xae6   :  { %v705_v63 = vpop.permute.xlu0 %704 }
 0xae7   :  { %v1882_v50 = vadd.f32 %v705_v63, %v697_v62 }
 0xae9   :  { %1470 = vtanh.f32 %v1882_v50 }
 0xaef   :  { %v1471_v1 = vpop.eup %1470 }
 0xaf0   :  { %710 = vrot.lane.b32.xlu2 %v1471_v1, %s1608_s23 }
 0xb49   :  { %v781_v58 = vpop.permute.xlu0 %780 }
 0xb4a   :  { %v783_v3 = vmul.f32 %v781_v58, %v761_v30  ;;  %v711_v4 = vpop.permute.xlu2 %710 }
 0xb4b   :  { %v1886_v6 = vmul.f32 %v711_v4, %v694_v51 }
 0xb4c   :  { %v855_v55 = vpack.c.bf16 %v783_v3, %v783_v3  ;;  %785 = vrot.lane.b32.xlu1 %v783_v3, %s1611_s12 }
 0xb4d   :  { %789 = vrot.lane.b32.xlu2 %v1886_v6, %s1608_s23 }
 0xb4e   :  { %857 = vrot.lane.b32.xlu0 %v855_v55, %s1611_s12 }
 0xba7   :  { %v790_v39 = vpop.permute.xlu2 %789 }
 0xbbe   :  { %v786_v7 = vpop.permute.xlu1 %785 }
 0xbbf   :  { %v792_v9 = vsel %vm138_vm2, %v786_v7, %v790_v39 }
 0xbc0   :  { %v793_v11 = vpack.c.bf16 %v792_v9, %v792_v9  ;;  %v858_v12 = vpop.permute.xlu0 %857 }
 0xbc1   :  { %1363 = vmatmul.msk.bf16.vlgmr.msra.gmra.mxu2 %vm138_vm2, %v858_v12 }
 0xbc2   :  { %1361 = vmatmul.msk.bf16.vlgmr.msra.gmra.mxu3 %vm234_vm7, %v793_v11 }
 0xc44   :  { %v871_v13 = vpop.f32.mrf.mxu2 }
 0xc45   :  { %v876_v2 = vrot.slane %v871_v13, 6  ;;  %v806_v15 = vpop.f32.mrf.mxu3 }
 0xc46   :  { %v807_v16 = vadd.f32 %v1772_v52, %v806_v15 }
 0xc47   :  { %v878_v5 = vadd.f32 %v876_v2, %v1868_v14 }
 0xc48   :  { %1472 = vtanh.f32 %v807_v16  ;;  %v1362_v60 = vmul.f32 -1.442695, %v807_v16 }
 0xc49   :  { %1474 = vtanh.f32 %v878_v5  ;;  %v1364_v37 = vmul.f32 -1.442695, %v878_v5 }
 0xc4b   :  { %1476 = vpow2.f32 %v1364_v37 }
 0xc4c   :  { %v873_v17 = vpop.f32.mrf.mxu2 }
 0xc4d   :  { %v808_v18 = vpop.f32.mrf.mxu3 }
 0xc4e   :  { %v1473_v36 = vpop.eup %1472 }
 0xc4f   :  { %v1475_v19 = vpop.eup %1474  ;;  %832 = vrot.lane.b32.xlu1 %v1473_v36, %s1608_s23 }
 0xc50   :  { %904 = vrot.lane.b32.xlu2 %v1475_v19, %s1608_s23 }
 0xc51   :  { %v1477_v38 = vpop.eup %1476 }
 0xc52   :  { %v882_v8 = vadd.f32 1.0, %v1477_v38 }
 0xc54   :  { %1478 = vrcp.f32 %v882_v8  ;;  %v894_v25 = vand.u32 2147483648, %v882_v8  ;;  %vm888_vm15 = vweird.f32 %v882_v8  ;;  %v892_v26 = vand.u32 2147483647, %v882_v8 }
 0xc55   :  { %1480 = vpow2.f32 %v1362_v60 }
 0xc56   :  { %v895_v28 = vor.u32 1.1754944e-38, %v894_v25  ;;  %vm893_vm3 = vcmp.eq.f32.partialorder %v892_v26, 8.507059e+37 }
 0xc5a   :  { %v1479_v44 = vpop.eup %1478 }
 0xc5b   :  { %v884_v20 = vmul.f32 %v1479_v44, %v882_v8  ;;  %v1481_v10 = vpop.eup %1480  ;;  %vm889_vm14 = vweird.f32 %v1479_v44 }
 0xc5c   :  { %v813_v23 = vadd.f32 1.0, %v1481_v10  ;;  %vm890_vm0 = vmor %vm888_vm15, %vm889_vm14 }
 0xc5d   :  { %v885_v21 = vsub.f32 1.0, %v884_v20 }
 0xc5e   :  { %1482 = vrcp.f32 %v813_v23  ;;  %v825_v42 = vand.u32 2147483648, %v813_v23  ;;  %vm819_vm5 = vweird.f32 %v813_v23  ;;  %v823_v45 = vand.u32 2147483647, %v813_v23 }
 0xc5f   :  { %v886_v22 = vmul.f32 %v1479_v44, %v885_v21 }
 0xc60   :  { %v826_v47 = vor.u32 1.1754944e-38, %v825_v42  ;;  %vm824_vm8 = vcmp.eq.f32.partialorder %v823_v45, 8.507059e+37 }
 0xc61   :  { %v887_v24 = vadd.f32 %v1479_v44, %v886_v22 }
 0xc63   :  { %v891_v27 = vsel %vm890_vm0, %v1479_v44, %v887_v24 }
 0xc64   :  { %v896_v29 = vsel %vm893_vm3, %v895_v28, %v891_v27  ;;  %v1483_v31 = vpop.eup %1482 }
 0xc65   :  { %v815_v33 = vmul.f32 %v1483_v31, %v813_v23  ;;  %vm820_vm4 = vweird.f32 %v1483_v31  ;;  %v902_v54 = vmul.f32 %v900_v53, %v896_v29 }
 0xc66   :  { %vm821_vm6 = vmor %vm819_vm5, %vm820_vm4 }
 0xc67   :  { %v816_v35 = vsub.f32 1.0, %v815_v33 }
 0xc69   :  { %v817_v40 = vmul.f32 %v1483_v31, %v816_v35 }
 0xc6b   :  { %v818_v41 = vadd.f32 %v1483_v31, %v817_v40 }
 0xc6d   :  { %v822_v46 = vsel %vm821_vm6, %v1483_v31, %v818_v41 }
 0xc6e   :  { %v827_v34 = vsel %vm824_vm8, %v826_v47, %v822_v46 }
 0xc6f   :  { %v830_v62 = vmul.f32 %v827_v34, %v1882_v50 }
 0xcaa   :  { %v905_v30 = vpop.permute.xlu2 %904 }
 0xcab   :  { %v907_v32 = vmul.f32 %v905_v30, %v896_v29 }
 0xcad   :  { %909 = vrot.lane.b32.xlu1 %v907_v32, %s1611_s12 }
 0xcc1   :  { %v833_v49 = vpop.permute.xlu1 %832 }
 0xcc2   :  { %v835_v51 = vmul.f32 %v833_v49, %v827_v34 }
 0xcc4   :  { %837 = vrot.lane.b32.xlu0 %v835_v51, %s1611_s12 }
 0xd1f   :  { %v910_v56 = vpop.permute.xlu1 %909 }
 0xd20   :  { %v1902_v43 = vadd.f32 %v910_v56, %v902_v54 }
 0xd22   :  { %1484 = vtanh.f32 %v1902_v43  ;;  %v1039_v56 = vrot.slane %v1902_v43, 6 }
 0xd28   :  { %v1485_v61 = vpop.eup %1484 }
 0xd29   :  { %915 = vrot.lane.b32.xlu0 %v1485_v61, %s1608_s23 }
 0xd36   :  { %v838_v63 = vpop.permute.xlu0 %837 }
 0xd37   :  { %v1907_v1 = vadd.f32 %v838_v63, %v830_v62 }
 0xd39   :  { %1486 = vtanh.f32 %v1907_v1 }
 0xd3f   :  { %v1487_v58 = vpop.eup %1486 }
 0xd40   :  { %843 = vrot.lane.b32.xlu2 %v1487_v58, %s1608_s23 }
 0xd9a   :  { %v844_v59 = vpop.permute.xlu2 %843 }
 0xd9b   :  { %v1911_v3 = vmul.f32 %v844_v59, %v827_v34  ;;  %v916_v4 = vpop.permute.xlu0 %915 }
 0xd9c   :  { %v918_v55 = vmul.f32 %v916_v4, %v896_v29 }
 0xd9d   :  { %v924_v39 = vrot.slane %v1911_v3, 6 }
 0xd9e   :  { %v993_v7 = vpack.c.bf16 %v918_v55, %v918_v55  ;;  %920 = vrot.lane.b32.xlu1 %v918_v55, %s1611_s12 }
 0xd9f   :  { %925 = vrot.lane.b32.xlu2 %v924_v39, %s1608_s23 }
 0xda0   :  { %v995_v50 = vrot.slane %v993_v7, 1 }
 0xda2   :  { %996 = vrot.lane.b32.xlu0 %v995_v50, %s1611_s12 }
 0xdf9   :  { %v926_v9 = vpop.permute.xlu2 %925 }
 0xe10   :  { %v921_v11 = vpop.permute.xlu1 %920 }
 0xe11   :  { %v928_v12 = vsel %vm138_vm2, %v921_v11, %v926_v9 }
 0xe12   :  { %v929_v13 = vpack.c.bf16 %v928_v12, %v928_v12 }
 0xe14   :  { %v931_v2 = vrot.slane %v929_v13, 1  ;;  %v997_v15 = vpop.permute.xlu0 %996 }
 0xe15   :  { %1367 = vmatmul.msk.bf16.vlgmr.msrb.gmra.mxu1 %vm138_vm2, %v997_v15 }
 0xe16   :  { %1365 = vmatmul.msk.bf16.vlgmr.msrb.gmra.mxu0 %vm234_vm7, %v931_v2 }
 0xe92   :  { %v1010_v16 = vpop.f32.mrf.mxu1 }
 0xe93   :  { %v1015_v5 = vrot.slane %v1010_v16, 4  ;;  %v944_v17 = vpop.f32.mrf.mxu0 }
 0xe94   :  { %v945_v18 = vadd.f32 %v1772_v52, %v944_v17 }
 0xe95   :  { %v1017_v36 = vadd.f32 %v1015_v5, %v1868_v14 }
 0xe96   :  { %1488 = vtanh.f32 %v945_v18  ;;  %v1366_v10 = vmul.f32 -1.442695, %v945_v18 }
 0xe97   :  { %1490 = vtanh.f32 %v1017_v36  ;;  %v1368_v44 = vmul.f32 -1.442695, %v1017_v36 }
 0xe99   :  { %1492 = vpow2.f32 %v1368_v44 }
 0xe9a   :  { %v1012_v19 = vpop.f32.mrf.mxu1 }
 0xe9b   :  { %v946_v37 = vpop.f32.mrf.mxu0 }
 0xe9c   :  { %v1489_v38 = vpop.eup %1488  ;;  %v1948_v37 = vld [vmem:[%s2024_s9] ss:$0 sm:$0xff] }
 0xe9d   :  { %v1491_v8 = vpop.eup %1490  ;;  %970 = vrot.lane.b32.xlu1 %v1489_v38, %s1608_s23 }
 0xe9e   :  { %1043 = vrot.lane.b32.xlu2 %v1491_v8, %s1608_s23 }
 0xe9f   :  { %v1493_v60 = vpop.eup %1492 }
 0xea0   :  { %v1021_v20 = vadd.f32 1.0, %v1493_v60 }
 0xea2   :  { %1494 = vrcp.f32 %v1021_v20  ;;  %v1033_v27 = vand.u32 2147483648, %v1021_v20  ;;  %vm1027_vm10 = vweird.f32 %v1021_v20  ;;  %v1031_v28 = vand.u32 2147483647, %v1021_v20 }
 0xea3   :  { %1496 = vpow2.f32 %v1366_v10 }
 0xea4   :  { %v1034_v30 = vor.u32 1.1754944e-38, %v1033_v27  ;;  %vm1032_vm12 = vcmp.eq.f32.partialorder %v1031_v28, 8.507059e+37 }
 0xea8   :  { %v1495_v21 = vpop.eup %1494 }
 0xea9   :  { %v1023_v52 = vmul.f32 %v1495_v21, %v1021_v20  ;;  %v1497_v23 = vpop.eup %1496  ;;  %vm1028_vm9 = vweird.f32 %v1495_v21 }
 0xeaa   :  { %v951_v25 = vadd.f32 1.0, %v1497_v23  ;;  %vm1029_vm11 = vmor %vm1027_vm10, %vm1028_vm9 }
 0xeab   :  { %v1024_v22 = vsub.f32 1.0, %v1023_v52 }
 0xeac   :  { %1498 = vrcp.f32 %v951_v25  ;;  %v963_v46 = vand.u32 2147483648, %v951_v25  ;;  %vm957_vm14 = vweird.f32 %v951_v25  ;;  %v961_v47 = vand.u32 2147483647, %v951_v25 }
 0xead   :  { %v1025_v24 = vmul.f32 %v1495_v21, %v1024_v22 }
 0xeae   :  { %v964_v34 = vor.u32 1.1754944e-38, %v963_v46  ;;  %vm962_vm0 = vcmp.eq.f32.partialorder %v961_v47, 8.507059e+37 }
 0xeaf   :  { %v1026_v26 = vadd.f32 %v1495_v21, %v1025_v24 }
 0xeb1   :  { %v1030_v29 = vsel %vm1029_vm11, %v1495_v21, %v1026_v26 }
 0xeb2   :  { %v1035_v31 = vsel %vm1032_vm12, %v1034_v30, %v1030_v29  ;;  %v1499_v33 = vpop.eup %1498 }
 0xeb3   :  { %v953_v40 = vmul.f32 %v1499_v33, %v951_v25  ;;  %vm958_vm13 = vweird.f32 %v1499_v33  ;;  %v1041_v61 = vmul.f32 %v1039_v56, %v1035_v31 }
 0xeb4   :  { %vm959_vm15 = vmor %vm957_vm14, %vm958_vm13 }
 0xeb5   :  { %v954_v41 = vsub.f32 1.0, %v953_v40 }
 0xeb7   :  { %v955_v42 = vmul.f32 %v1499_v33, %v954_v41 }
 0xeb9   :  { %v956_v45 = vadd.f32 %v1499_v33, %v955_v42 }
 0xebb   :  { %v960_v49 = vsel %vm959_vm15, %v1499_v33, %v956_v45  ;;  %vm1271_vm15 = vcmask 7168  }
 0xebc   :  { %v965_v53 = vsel %vm962_vm0, %v964_v34, %v960_v49  ;;  %vm1273_vm0 = vcmask 15360  }
 0xebd   :  { %v968_v59 = vmul.f32 %v965_v53, %v1907_v1 }
 0xef8   :  { %v1044_v32 = vpop.permute.xlu2 %1043 }
 0xef9   :  { %v1046_v35 = vmul.f32 %v1044_v32, %v1035_v31 }
 0xefb   :  { %1048 = vrot.lane.b32.xlu1 %v1046_v35, %s1611_s12 }
 0xf0f   :  { %v971_v51 = vpop.permute.xlu1 %970 }
 0xf10   :  { %v973_v54 = vmul.f32 %v971_v51, %v965_v53 }
 0xf12   :  { %975 = vrot.lane.b32.xlu0 %v973_v54, %s1611_s12 }
 0xf6d   :  { %v1049_v62 = vpop.permute.xlu1 %1048 }
 0xf6e   :  { %v1927_v63 = vadd.f32 %v1049_v62, %v1041_v61 }
 0xf70   :  { %1500 = vtanh.f32 %v1927_v63 }
 0xf76   :  { %v1501_v58 = vpop.eup %1500 }
 0xf77   :  { %1054 = vrot.lane.b32.xlu0 %v1501_v58, %s1608_s23  ;;  %v1178_v58 = vrot.slane %v1927_v63, 6 }
 0xf84   :  { %v976_v4 = vpop.permute.xlu0 %975 }
 0xf85   :  { %v1932_v55 = vadd.f32 %v976_v4, %v968_v59 }
 0xf87   :  { %1502 = vtanh.f32 %v1932_v55 }
 0xf8d   :  { %v1503_v39 = vpop.eup %1502 }
 0xf8e   :  { %981 = vrot.lane.b32.xlu2 %v1503_v39, %s1608_s23 }
 0xfe8   :  { %v982_v43 = vpop.permute.xlu2 %981 }
 0xfe9   :  { %v1936_v7 = vmul.f32 %v982_v43, %v965_v53  ;;  %v1055_v50 = vpop.permute.xlu0 %1054 }
 0xfea   :  { %v1057_v9 = vmul.f32 %v1055_v50, %v1035_v31 }
 0xfeb   :  { %v1063_v11 = vrot.slane %v1936_v7, 4 }
 0xfec   :  { %v1132_v12 = vpack.c.bf16 %v1057_v9, %v1057_v9  ;;  %1059 = vrot.lane.b32.xlu1 %v1057_v9, %s1611_s12 }
 0xfed   :  { %1064 = vrot.lane.b32.xlu2 %v1063_v11, %s1608_s23 }
 0xfee   :  { %v1134_v1 = vrot.slane %v1132_v12, 2 }
 0xff0   :  { %1135 = vrot.lane.b32.xlu0 %v1134_v1, %s1611_s12 }
0x1047   :  { %v1065_v13 = vpop.permute.xlu2 %1064 }
0x105e   :  { %v1060_v2 = vpop.permute.xlu1 %1059 }
0x105f   :  { %v1067_v15 = vsel %vm138_vm2, %v1060_v2, %v1065_v13 }
0x1060   :  { %v1068_v16 = vpack.c.bf16 %v1067_v15, %v1067_v15 }
0x1062   :  { %v1070_v5 = vrot.slane %v1068_v16, 2  ;;  %v1136_v17 = vpop.permute.xlu0 %1135 }
0x1063   :  { %1371 = vmatmul.msk.bf16.vlgmr.msrb.gmra.mxu2 %vm138_vm2, %v1136_v17 }
0x1064   :  { %1369 = vmatmul.msk.bf16.vlgmr.msrb.gmra.mxu3 %vm234_vm7, %v1070_v5 }
0x10e6   :  { %v1149_v18 = vpop.f32.mrf.mxu2 }
0x10e7   :  { %v1154_v36 = vrot.slane %v1149_v18, 2  ;;  %v1083_v19 = vpop.f32.mrf.mxu3 }
0x10e8   :  { %v1084_v38 = vadd.f32 %v1948_v37, %v1083_v19 }
0x10e9   :  { %v1156_v8 = vadd.f32 %v1154_v36, %v1868_v14 }
0x10ea   :  { %1504 = vtanh.f32 %v1084_v38  ;;  %v1370_v24 = vmul.f32 -1.442695, %v1084_v38 }
0x10eb   :  { %1506 = vtanh.f32 %v1156_v8  ;;  %v1372_v10 = vmul.f32 -1.442695, %v1156_v8 }
0x10ed   :  { %1508 = vpow2.f32 %v1372_v10 }
0x10ee   :  { %v1151_v44 = vpop.f32.mrf.mxu2 }
0x10ef   :  { %v1085_v60 = vpop.f32.mrf.mxu3 }
0x10f0   :  { %v1505_v20 = vpop.eup %1504 }
0x10f1   :  { %v1507_v21 = vpop.eup %1506  ;;  %1109 = vrot.lane.b32.xlu1 %v1505_v20, %s1608_s23 }
0x10f2   :  { %1182 = vrot.lane.b32.xlu2 %v1507_v21, %s1608_s23 }
0x10f3   :  { %v1509_v52 = vpop.eup %1508 }
0x10f4   :  { %v1160_v22 = vadd.f32 1.0, %v1509_v52 }
0x10f6   :  { %1510 = vrcp.f32 %v1160_v22  ;;  %v1172_v30 = vand.u32 2147483648, %v1160_v22  ;;  %vm1166_vm4 = vweird.f32 %v1160_v22  ;;  %v1170_v31 = vand.u32 2147483647, %v1160_v22 }
0x10f7   :  { %1512 = vpow2.f32 %v1370_v24 }
0x10f8   :  { %v1173_v33 = vor.u32 1.1754944e-38, %v1172_v30  ;;  %vm1171_vm6 = vcmp.eq.f32.partialorder %v1170_v31, 8.507059e+37 }
0x10fc   :  { %v1511_v23 = vpop.eup %1510 }
0x10fd   :  { %v1162_v25 = vmul.f32 %v1511_v23, %v1160_v22  ;;  %v1513_v26 = vpop.eup %1512  ;;  %vm1167_vm3 = vweird.f32 %v1511_v23 }
0x10fe   :  { %v1090_v28 = vadd.f32 1.0, %v1513_v26  ;;  %vm1168_vm5 = vmor %vm1166_vm4, %vm1167_vm3  ;;  %vm1275_vm3 = vcmask 23552   ;;  %vm1278_vm4 = vcmask 39936  }
0x10ff   :  { %v1163_v14 = vsub.f32 1.0, %v1162_v25 }
0x1100   :  { %1514 = vrcp.f32 %v1090_v28  ;;  %v1102_v34 = vand.u32 2147483648, %v1090_v28  ;;  %vm1096_vm9 = vweird.f32 %v1090_v28  ;;  %v1100_v51 = vand.u32 2147483647, %v1090_v28 }
0x1101   :  { %v1164_v27 = vmul.f32 %v1511_v23, %v1163_v14 }
0x1102   :  { %v1103_v54 = vor.u32 1.1754944e-38, %v1102_v34  ;;  %vm1101_vm11 = vcmp.eq.f32.partialorder %v1100_v51, 8.507059e+37 }
0x1103   :  { %v1165_v29 = vadd.f32 %v1511_v23, %v1164_v27 }
0x1105   :  { %v1169_v32 = vsel %vm1168_vm5, %v1511_v23, %v1165_v29  ;;  %vm1280_vm5 = vcmask 48128  }
0x1106   :  { %v1174_v35 = vsel %vm1171_vm6, %v1173_v33, %v1169_v32  ;;  %v1515_v41 = vpop.eup %1514  ;;  %vm1282_vm6 = vcmask 56320  }
0x1107   :  { %v1092_v45 = vmul.f32 %v1515_v41, %v1090_v28  ;;  %vm1097_vm8 = vweird.f32 %v1515_v41  ;;  %v1180_v59 = vmul.f32 %v1178_v58, %v1174_v35 }
0x1108   :  { %vm1098_vm10 = vmor %vm1096_vm9, %vm1097_vm8 }
0x1109   :  { %v1093_v46 = vsub.f32 1.0, %v1092_v45 }
0x110b   :  { %v1094_v47 = vmul.f32 %v1515_v41, %v1093_v46 }
0x110d   :  { %v1095_v49 = vadd.f32 %v1515_v41, %v1094_v47 }
0x110f   :  { %v1099_v53 = vsel %vm1098_vm10, %v1515_v41, %v1095_v49 }
0x1110   :  { %v1104_v61 = vsel %vm1101_vm11, %v1103_v54, %v1099_v53 }
0x1111   :  { %v1107_v50 = vmul.f32 %v1104_v61, %v1932_v55  ;;  %v1398_v55 = vld [vmem:[%s2018_s3] ss:$0 sm:$0xff]  ;;  %s1614_s3 = smov [#allocation8]  }
0x1112   :  { %s1299_s20 = sshll.u32 %s1614_s3, 4  ;;  %s1300_s20 = int_to_ptr.vmem [resolvable:$true] %s1299_s20 }
0x114c   :  { %v1183_v40 = vpop.permute.xlu2 %1182 }
0x114d   :  { %v1185_v42 = vmul.f32 %v1183_v40, %v1174_v35 }
0x114f   :  { %1187 = vrot.lane.b32.xlu1 %v1185_v42, %s1611_s12 }
0x1163   :  { %v1110_v56 = vpop.permute.xlu1 %1109 }
0x1164   :  { %v1112_v62 = vmul.f32 %v1110_v56, %v1104_v61 }
0x1166   :  { %1114 = vrot.lane.b32.xlu0 %v1112_v62, %s1611_s12 }
0x11c1   :  { %v1188_v4 = vpop.permute.xlu1 %1187 }
0x11c2   :  { %v1190_v39 = vadd.f32 %v1188_v4, %v1180_v59 }
0x11c4   :  { %1516 = vtanh.f32 %v1190_v39 }
0x11ca   :  { %v1517_v43 = vpop.eup %1516 }
0x11cb   :  { %1193 = vrot.lane.b32.xlu0 %v1517_v43, %s1608_s23 }
0x11d8   :  { %v1115_v9 = vpop.permute.xlu0 %1114 }
0x11d9   :  { %v1959_v11 = vadd.f32 %v1115_v9, %v1107_v50 }
0x11db   :  { %1518 = vtanh.f32 %v1959_v11 }
0x11e1   :  { %v1519_v12 = vpop.eup %1518 }
0x11e2   :  { %1120 = vrot.lane.b32.xlu2 %v1519_v12, %s1608_s23 }
0x123c   :  { %v1121_v1 = vpop.permute.xlu2 %1120 }
0x123d   :  { %v1963_v13 = vmul.f32 %v1121_v1, %v1104_v61  ;;  %v1194_v63 = vpop.permute.xlu0 %1193  ;;  %v1399_v1 = vld [vmem:[#allocation2] ss:$0 sm:$0xff] }
0x123e   :  { %v1196_v2 = vmul.f32 %v1194_v63, %v1174_v35  ;;  %v1613_v63 = vmov 0  }
0x123f   :  { %v1202_v15 = vrot.slane %v1963_v13, 2  ;;  %1395 = vset.pattern.permute.xlu0 %v1613_v63 }
0x1240   :  { %1198 = vrot.lane.b32.xlu1 %v1196_v2, %s1611_s12 }
0x1241   :  { %1203 = vrot.lane.b32.xlu2 %v1202_v15, %s1608_s23 }
0x1248   :  { %294 = vrot.lane.b32.xlu1 %v1398_v55, %s1612_s19 }
0x129b   :  { %v1204_v16 = vpop.permute.xlu2 %1203 }
0x12b2   :  { %v1199_v5 = vpop.permute.xlu1 %1198 }
0x12b3   :  { %v1206_v17 = vsel %vm138_vm2, %v1199_v5, %v1204_v16  ;;  %vm302_vm2 = vcmask 254976  }
0x12b4   :  { %v1207_v18 = vpack.c.bf16 %v1206_v17, %v1206_v17 }
0x12b6   :  { %v1209_v36 = vrot.slane %v1207_v18, 3 }
0x12b8   :  { %1373 = vmatmul.msk.bf16.vlgmr.msra.gmra.mxu0 %vm234_vm7, %v1209_v36 }
0x12ba   :  { %v1973_v19 = vpop.permute.xlu1 %294 }
0x12bb   :  { %v297_v38 = vmul.f32 %v1973_v19, %v1789_v48  ;;  %v436_v8 = vmul.f32 %v1822_v57, %v1973_v19  ;;  %v575_v44 = vmul.f32 %v1853_v0, %v1973_v19  ;;  %v714_v42 = vmul.f32 %v1886_v6, %v1973_v19 }
0x12bc   :  { %v847_v34 = vmul.f32 %v1911_v3, %v1973_v19  ;;  %v985_v51 = vmul.f32 %v1936_v7, %v1973_v19  ;;  %v1124_v39 = vmul.f32 %v1963_v13, %v1973_v19 }
0x12bd   :  { %299 = vrot.lane.b32.xlu2 %v297_v38, %s1611_s12 }
0x12c5   :  { %438 = vrot.lane.b32.xlu2 %v436_v8, %s1611_s12 }
0x12cd   :  { %577 = vrot.lane.b32.xlu2 %v575_v44, %s1611_s12 }
0x1317   :  { %v300_v60 = vpop.permute.xlu2 %299 }
0x1318   :  { %v303_v23 = vsel %vm302_vm2, %v300_v60, 0.0 }
0x131f   :  { %v439_v20 = vpop.permute.xlu2 %438 }
0x1320   :  { %v441_v41 = vsel %vm302_vm2, %v439_v20, 0.0 }
0x1327   :  { %v578_v21 = vpop.permute.xlu2 %577 }
0x1328   :  { %v580_v10 = vsel %vm302_vm2, %v578_v21, 0.0 }
0x1329   :  { %581 = vadd.xlane.f32.xlu2 %v580_v10 }
0x1335   :  { %v1222_v48 = vpop.f32.mrf.mxu0 }
0x1336   :  { %v1223_v52 = vadd.f32 %v1948_v37, %v1222_v48 }
0x1338   :  { %1520 = vtanh.f32 %v1223_v52  ;;  %v1374_v0 = vmul.f32 -1.442695, %v1223_v52 }
0x133a   :  { %1522 = vpow2.f32 %v1374_v0 }
0x133d   :  { %v1224_v22 = vpop.f32.mrf.mxu0 }
0x133e   :  { %v1521_v57 = vpop.eup %1520 }
0x133f   :  { %1248 = vrot.lane.b32.xlu0 %v1521_v57, %s1608_s23 }
0x1340   :  { %v1523_v24 = vpop.eup %1522 }
0x1341   :  { %v1229_v25 = vadd.f32 1.0, %v1523_v24 }
0x1343   :  { %1524 = vrcp.f32 %v1229_v25  ;;  %v1241_v37 = vand.u32 2147483648, %v1229_v25  ;;  %vm1235_vm12 = vweird.f32 %v1229_v25  ;;  %v1239_v30 = vand.u32 2147483647, %v1229_v25 }
0x1345   :  { %v1242_v32 = vor.u32 1.1754944e-38, %v1241_v37  ;;  %vm1240_vm14 = vcmp.eq.f32.partialorder %v1239_v30, 8.507059e+37 }
0x1349   :  { %v1525_v14 = vpop.eup %1524 }
0x134a   :  { %v1231_v26 = vmul.f32 %v1525_v14, %v1229_v25  ;;  %vm1236_vm7 = vweird.f32 %v1525_v14 }
0x134b   :  { %vm1237_vm13 = vmor %vm1235_vm12, %vm1236_vm7 }
0x134c   :  { %v1232_v27 = vsub.f32 1.0, %v1231_v26 }
0x134e   :  { %v1233_v28 = vmul.f32 %v1525_v14, %v1232_v27 }
0x1350   :  { %v1234_v29 = vadd.f32 %v1525_v14, %v1233_v28 }
0x1352   :  { %v1238_v31 = vsel %vm1237_vm13, %v1525_v14, %v1234_v29 }
0x1353   :  { %v1243_v35 = vsel %vm1240_vm14, %v1242_v32, %v1238_v31 }
0x1354   :  { %v1246_v45 = vmul.f32 %v1243_v35, %v1959_v11 }
0x1369   :  { %304 = vadd.xlane.f32.xlu0 %v303_v23 }
0x139c   :  { %v582_v43 = vpop.xlane.xlu2 %581 }
0x13b1   :  { %v1249_v33 = vpop.permute.xlu0 %1248 }
0x13b2   :  { %v1251_v40 = vmul.f32 %v1249_v33, %v1243_v35 }
0x13b4   :  { %1253 = vrot.lane.b32.xlu1 %v1251_v40, %s1611_s12 }
0x13dc   :  { %v305_v56 = vpop.xlane.xlu0 %304 }
0x13de   :  { %442 = vadd.xlane.f32.xlu1 %v441_v41 }
0x13f7   :  { %716 = vrot.lane.b32.xlu1 %v714_v42, %s1611_s12 }
0x1426   :  { %v1254_v46 = vpop.permute.xlu1 %1253 }
0x1427   :  { %v1256_v47 = vadd.f32 %v1254_v46, %v1246_v45 }
0x1429   :  { %1526 = vtanh.f32 %v1256_v47 }
0x142f   :  { %v1527_v49 = vpop.eup %1526 }
0x1430   :  { %1259 = vrot.lane.b32.xlu0 %v1527_v49, %s1608_s23  ;;  %s1301_s23 = sshll.u32 %s2025_s10, 4  ;;  %s1302_s23 = int_to_ptr.hbm [resolvable:$true] %s1301_s23 }
0x1438   :  { %849 = vrot.lane.b32.xlu0 %v847_v34, %s1611_s12 }
0x1440   :  { %987 = vrot.lane.b32.xlu0 %v985_v51, %s1611_s12 }
0x1451   :  { %v443_v6 = vpop.xlane.xlu1 %442 }
0x1452   :  { %v1272_v50 = vsel %vm1271_vm15, %v305_v56, %v443_v6 }
0x1453   :  { %v1274_v9 = vsel %vm1273_vm0, %v1272_v50, %v582_v43 }
0x1469   :  { %v717_v53 = vpop.permute.xlu1 %716 }
0x146a   :  { %v719_v54 = vsel %vm302_vm2, %v717_v53, 0.0 }
0x146b   :  { %720 = vadd.xlane.f32.xlu2 %v719_v54 }
0x14a2   :  { %v1260_v61 = vpop.permute.xlu0 %1259 }
0x14a3   :  { %v1262_v62 = vmul.f32 %v1260_v61, %v1243_v35 }
0x14a5   :  { %v1263_v58 = vmul.f32 %v1262_v62, %v1973_v19 }
0x14a7   :  { %1265 = vrot.lane.b32.xlu1 %v1263_v58, %s1611_s12 }
0x14aa   :  { %v850_v3 = vpop.permute.xlu0 %849 }
0x14ab   :  { %v852_v59 = vsel %vm302_vm2, %v850_v3, 0.0 }
0x14ac   :  { %853 = vadd.xlane.f32.xlu2 %v852_v59 }
0x14b2   :  { %v988_v4 = vpop.permute.xlu0 %987 }
0x14b3   :  { %v990_v7 = vsel %vm302_vm2, %v988_v4, 0.0 }
0x14b4   :  { %991 = vadd.xlane.f32.xlu0 %v990_v7 }
0x14c4   :  { %1126 = vrot.lane.b32.xlu2 %v1124_v39, %s1611_s12 }
0x14c8   :  { %1288 = vperm.xlu0 %1395, %v1399_v1  }
0x14de   :  { %v721_v11 = vpop.xlane.xlu2 %720 }
0x14df   :  { %v1276_v12 = vsel %vm1275_vm3, %v1274_v9, %v721_v11 }
0x1519   :  { %v1266_v2 = vpop.permute.xlu1 %1265 }
0x151a   :  { %v1268_v15 = vsel %vm302_vm2, %v1266_v2, 0.0 }
0x151b   :  { %1269 = vadd.xlane.f32.xlu2 %v1268_v15 }
0x151f   :  { %v854_v55 = vpop.xlane.xlu2 %853 }
0x1520   :  { %v1277_v13 = vsel %vm96_vm1, %v1276_v12, %v854_v55  ;;  %vm1292_vm1 = vcmask 58368  }
0x1527   :  { %v1127_v16 = vpop.permute.xlu2 %1126  ;;  %v992_v17 = vpop.xlane.xlu0 %991 }
0x1528   :  { %v1129_v5 = vsel %vm302_vm2, %v1127_v16, 0.0  ;;  %v1279_v18 = vsel %vm1278_vm4, %v1277_v13, %v992_v17 }
0x1529   :  { %1130 = vadd.xlane.f32.xlu1 %v1129_v5 }
0x153a   :  { %v1289_v19 = vpop.permute.xlu0 %1288 }
0x158e   :  { %v1270_v38 = vpop.xlane.xlu2 %1269 }
0x159c   :  { %v1131_v36 = vpop.xlane.xlu1 %1130 }
0x159d   :  { %v1281_v8 = vsel %vm1280_vm5, %v1279_v18, %v1131_v36 }
0x159e   :  { %v1283_v44 = vsel %vm1282_vm6, %v1281_v8, %v1270_v38 }
0x159f   :  { %v1291_v60 = vadd.f32 %v1289_v19, %v1283_v44 }
0x15a1   :  { %1293 = vst.msk [vmem:[#allocation8] sm:$0x3] %vm1292_vm1, %v1291_v60 }
0x15a2   :  { %1304 = dma.vmem_to_hbm [thread:$0]  %s1300_s20, 32, %s1302_s23, [#allocation5]  }
0x15a3   :  { %1605 = dma.done.wait [#allocation5], 32  }
0x15a4   :  { %1606 = vsyncadd [#allocation5], 4294967264 }
0x15a5   :  { %1309 = vsyncpa [#allocation4], 1 }
0x15a6   :  { %1310 = vsyncpa [#allocation7], 1 }
0x15a7   :  { %1311 = vsyncpa [#allocation5], 1 }

</bundles_post_ra>
